<compile_context>
chip_gen: v7x
topology: tpu7x:2x2x1
jax: 0.10.0
libtpu: 0.0.40
codegen_flags: <defaults>
</compile_context>

<pallas_src>
import functools

import jax
import jax.numpy as jnp
from jax.experimental import pallas as pl
from jax.experimental.pallas import tpu as pltpu


# ----------------------------- kernel ------------------------------------- #

def _layer_norm(x, gamma, beta, eps=1e-5):
    mu = jnp.mean(x, axis=-1, keepdims=True)
    var = jnp.mean((x - mu) ** 2, axis=-1, keepdims=True)
    return (x - mu) * jax.lax.rsqrt(var + eps) * gamma + beta


def encoder_stack_kernel(nhead,
                         x_ref, pos_ref,
                         wqk_ref, wv_ref, wo_ref, w1_ref, w2_ref, vec_ref,
                         out_ref,
                         h_ref):
    """One grid step == one DETR encoder layer over one (Bb, S, E) batch block."""
    layer = pl.program_id(1)
    last = pl.num_programs(1) - 1
    Bb, S, E = h_ref.shape
    hd = E // nhead
    Dff = w1_ref.shape[-1]

    # First layer of this batch block: pull activations into the VMEM carry.
    @pl.when(layer == 0)
    def _():
        h_ref[...] = x_ref[...].astype(jnp.float32)

    x3 = h_ref[...]                                   # (Bb, S, E) f32, resident
    pos3 = pos_ref[...].astype(jnp.float32)

    # Unpack the per-layer bias / LayerNorm slab (one DMA instead of nine).
    vec = vec_ref[0]                                  # (9, W) f32
    bqk = vec[0, :2 * E]
    bv = vec[1, :E]
    bo = vec[2, :E]
    b1 = vec[3, :Dff]
    b2 = vec[4, :E]
    g1 = vec[5, :E]
    be1 = vec[6, :E]
    g2 = vec[7, :E]
    be2 = vec[8, :E]

    x2 = x3.reshape(Bb * S, E)                        # batch folded into M dim
    qk_in = (x3 + pos3).reshape(Bb * S, E).astype(jnp.bfloat16)   # pos on q/k only
    x_bf = x2.astype(jnp.bfloat16)

    # Fused Q|K projection (pre-transposed, q-scale folded in) + V projection.
    qk = jnp.dot(qk_in, wqk_ref[0], preferred_element_type=jnp.float32) + bqk
    v = jnp.dot(x_bf, wv_ref[0], preferred_element_type=jnp.float32) + bv

    q3 = qk[:, :E].reshape(Bb, S, E).astype(jnp.bfloat16)   # lane-aligned slices
    k3 = qk[:, E:].reshape(Bb, S, E).astype(jnp.bfloat16)
    v3 = v.reshape(Bb, S, E).astype(jnp.bfloat16)

    # Multi-head attention. Head recombination is fused into W_o: each head
    # accumulates ctx_h @ W_o[h] into a full-width f32 value (no VMEM slab,
    # no masked partial-lane stores); per-head temporaries die each iteration.
    attn_out = None
    for h in range(nhead):
        lo = h * hd
        qh = q3[:, :, lo:lo + hd]
        kh = k3[:, :, lo:lo + hd]
        vh = v3[:, :, lo:lo + hd]
        s = jnp.einsum("bqd,bkd->bqk", qh, kh,
                       preferred_element_type=jnp.float32)        # (Bb, S, S)
        s = s - jnp.max(s, axis=-1, keepdims=True)
        p = jnp.exp(s)
        p = p * pl.reciprocal(jnp.sum(p, axis=-1, keepdims=True), approx=True)
        ctx = jnp.einsum("bqk,bkd->bqd", p.astype(jnp.bfloat16), vh,
                         preferred_element_type=jnp.float32)      # (Bb, S, hd)
        contrib = jnp.dot(ctx.reshape(Bb * S, hd).astype(jnp.bfloat16),
                          wo_ref[0, h], preferred_element_type=jnp.float32)
        attn_out = contrib if attn_out is None else attn_out + contrib
    attn_out = attn_out + bo                                       # (Bb*S, E) f32

    # residual + norm1 (f32 elementwise math)
    x1 = _layer_norm(x2 + attn_out, g1, be1)

    # feed-forward (ReLU, DETR default)
    h1 = jnp.dot(x1.astype(jnp.bfloat16), w1_ref[0],
                 preferred_element_type=jnp.float32) + b1
    h1 = jnp.maximum(h1, 0.0)
    ff = jnp.dot(h1.astype(jnp.bfloat16), w2_ref[0],
                 preferred_element_type=jnp.float32) + b2

    # residual + norm2
    y = _layer_norm(x1 + ff, g2, be2).reshape(Bb, S, E)

    # Carry to the next layer, or write the final output directly (self.norm
    # is None in the DETR encoder default, normalize_before=False).
    @pl.when(layer < last)
    def _():
        h_ref[...] = y

    @pl.when(layer == last)
    def _():
        out_ref[...] = y.astype(out_ref.dtype)


# ----------------------------- wrapper ------------------------------------ #

def _pack_params(layer_params, nhead, compute_dtype=jnp.bfloat16):
    """Stack per-layer PyTorch-layout params into kernel layout.

    Weights are pre-transposed (x @ W form), Q|K fused with the 1/sqrt(hd)
    scale folded into the Q half, W_o reshaped to (H, hd, E), and all matmul
    weights cast to bf16. The nine small vectors (biases + LN params) are
    packed into one f32 (L, 9, W) slab.
    """
    E = layer_params[0]["wo"].shape[0]
    Dff = layer_params[0]["w1"].shape[0]
    hd = E // nhead
    scale = 1.0 / float(hd) ** 0.5
    W = max(2 * E, Dff, E)

    def stack(fn):
        return jnp.stack([fn(p) for p in layer_params], axis=0)

    def pad_row(v):
        v = v.reshape(-1)
        return jnp.pad(v, (0, W - v.shape[0]))

    def vec_slab(p):
        bqk = jnp.concatenate([p["bqkv"][0, :E] * scale, p["bqkv"][0, E:2 * E]])
        rows = [bqk,                     # 0: fused q|k bias (q half scaled)
                p["bqkv"][0, 2 * E:],    # 1: v bias
                p["bo"][0],              # 2: out-proj bias
                p["b1"][0],              # 3: ffn bias 1
                p["b2"][0],              # 4: ffn bias 2
                p["g1"][0], p["be1"][0],  # 5,6: norm1
                p["g2"][0], p["be2"][0]]  # 7,8: norm2
        return jnp.stack([pad_row(r) for r in rows], axis=0)      # (9, W)

    return {
        "wqk": stack(lambda p: jnp.concatenate(
            [p["wqkv"][:E].T * scale, p["wqkv"][E:2 * E].T],
            axis=1).astype(compute_dtype)),                        # (L, E, 2E)
        "wv": stack(lambda p: p["wqkv"][2 * E:].T.astype(compute_dtype)),  # (L, E, E)
        "wo": stack(lambda p: p["wo"].T.reshape(nhead, hd, E)
                    .astype(compute_dtype)),                       # (L, H, hd, E)
        "w1": stack(lambda p: p["w1"].T.astype(compute_dtype)),    # (L, E, Dff)
        "w2": stack(lambda p: p["w2"].T.astype(compute_dtype)),    # (L, Dff, E)
        "vec": stack(vec_slab).astype(jnp.float32),                # (L, 9, W)
    }


def _vmem_limit_bytes():
    """Generation-aware scoped-VMEM limit (~48 MiB on v7x, ~96 MiB on v5e/v6e)."""
    cap = 64 * 1024 * 1024
    try:
        cap = int(getattr(pltpu.get_tpu_info(), "vmem_capacity_bytes", cap))
    except Exception:
        pass
    return max(32 * 1024 * 1024, min(cap * 3 // 4, 96 * 1024 * 1024))


def transformer_encoder_pallas(src_sbe, pos_sbe, layer_params, nhead,
                               mask=None, src_key_padding_mask=None,
                               batch_block=1):
    """src_sbe, pos_sbe: (S, B, E) as in PyTorch DETR.  Returns (S, B, E)."""
    assert mask is None and src_key_padding_mask is None, \
        "attn_mask / src_key_padding_mask are not implemented in the fused kernel"

    S, B, E = src_sbe.shape
    L = len(layer_params)
    Dff = layer_params[0]["w1"].shape[0]
    assert E % 128 == 0, "E must be a multiple of 128 for lane-dense stores"
    assert S % 8 == 0, "pad S to a multiple of 8 before calling the kernel"
    assert B % batch_block == 0
    Bb = batch_block
    nb = B // Bb

    x = jnp.transpose(src_sbe, (1, 0, 2))    # -> (B, S, E)
    pos = jnp.transpose(pos_sbe, (1, 0, 2))
    packed = _pack_params(layer_params, nhead)
    wqk, wv, wo, w1, w2, vec = (packed[k] for k in
                                ("wqk", "wv", "wo", "w1", "w2", "vec"))
    weight_args = (wqk, wv, wo, w1, w2, vec)

    def wspec(arr):
        nd = arr.ndim
        return pl.BlockSpec((1,) + arr.shape[1:],
                            lambda b, l, _nd=nd: (l,) + (0,) * (_nd - 1))

    act_spec = pl.BlockSpec((Bb, S, E), lambda b, l: (b, 0, 0))
    in_specs = [act_spec, act_spec] + [wspec(w) for w in weight_args]
    out_spec = pl.BlockSpec((Bb, S, E), lambda b, l: (b, 0, 0))

    flops = 2 * L * B * S * (4 * E * E + 2 * E * Dff + 2 * S * E)
    transcendentals = L * B * nhead * S * S
    weight_bytes = (2 * sum(int(a.size) for a in (wqk, wv, wo, w1, w2))
                    + 4 * int(vec.size))
    bytes_accessed = 4 * (int(x.size) + int(pos.size) + B * S * E) + nb * weight_bytes

    grid_spec = pltpu.PrefetchScalarGridSpec(
        num_scalar_prefetch=0,
        grid=(nb, L),                               # batch blocks x layers
        in_specs=in_specs,
        out_specs=out_spec,
        scratch_shapes=[
            pltpu.VMEM((Bb, S, E), jnp.float32),    # activation carry (f32)
        ],
    )

    out = pl.pallas_call(
        functools.partial(encoder_stack_kernel, nhead),
        out_shape=jax.ShapeDtypeStruct((B, S, E), src_sbe.dtype),
        grid_spec=grid_spec,
        compiler_params=pltpu.CompilerParams(
            # batch blocks are independent (uses both TCs on v7x);
            # the layer axis is a sequential carry.
            dimension_semantics=("parallel", "arbitrary"),
            vmem_limit_bytes=_vmem_limit_bytes(),
        ),
        cost_estimate=pl.CostEstimate(
            flops=flops,
            transcendentals=transcendentals,
            bytes_accessed=bytes_accessed),
    )(x, pos, *weight_args)

    return jnp.transpose(out, (1, 0, 2))     # -> (S, B, E)


# ----------------------------- reference (pure JAX) ------------------------ #

def _ref_layer(x, pos, p, nhead):
    S, E = x.shape[1], x.shape[2]
    hd = E // nhead
    qk_in = x + pos
    wqkv, bqkv = p["wqkv"], p["bqkv"][0]
    q = qk_in @ wqkv[:E].T + bqkv[:E]
    k = qk_in @ wqkv[E:2 * E].T + bqkv[E:2 * E]
    v = x @ wqkv[2 * E:].T + bqkv[2 * E:]
    q = q.reshape(-1, S, nhead, hd).transpose(0, 2, 1, 3) / (hd ** 0.5)
    k = k.reshape(-1, S, nhead, hd).transpose(0, 2, 1, 3)
    v = v.reshape(-1, S, nhead, hd).transpose(0, 2, 1, 3)
    a = jax.nn.softmax(jnp.einsum("bhqd,bhkd->bhqk", q, k), axis=-1)
    o = jnp.einsum("bhqk,bhkd->bhqd", a, v).transpose(0, 2, 1, 3).reshape(-1, S, E)
    o = o @ p["wo"].T + p["bo"][0]

    def ln(y, g, b):
        mu = y.mean(-1, keepdims=True)
        var = ((y - mu) ** 2).mean(-1, keepdims=True)
        return (y - mu) * jax.lax.rsqrt(var + 1e-5) * g + b

    x1 = ln(x + o, p["g1"][0], p["be1"][0])
    ff = jnp.maximum(x1 @ p["w1"].T + p["b1"][0], 0.0) @ p["w2"].T + p["b2"][0]
    return ln(x1 + ff, p["g2"][0], p["be2"][0])


def _ref_encoder(src_sbe, pos_sbe, layer_params, nhead):
    x = jnp.transpose(src_sbe, (1, 0, 2))
    pos = jnp.transpose(pos_sbe, (1, 0, 2))
    for p in layer_params:
        x = _ref_layer(x, pos, p, nhead)
    return jnp.transpose(x, (1, 0, 2))


# ----------------------------- main ---------------------------------------- #

def _init_layer_params(key, d_model, nhead, dim_ff):
    ks = jax.random.split(key, 8)
    s = 0.02
    return {
        "wqkv": (jax.random.normal(ks[0], (3 * d_model, d_model), jnp.float32) * s),
        "bqkv": (jax.random.normal(ks[1], (1, 3 * d_model), jnp.float32) * s),
        "wo":   (jax.random.normal(ks[2], (d_model, d_model), jnp.float32) * s),
        "bo":   (jax.random.normal(ks[3], (1, d_model), jnp.float32) * s),
        "w1":   (jax.random.normal(ks[4], (dim_ff, d_model), jnp.float32) * s),
        "b1":   (jax.random.normal(ks[5], (1, dim_ff), jnp.float32) * s),
        "w2":   (jax.random.normal(ks[6], (d_model, dim_ff), jnp.float32) * s),
        "b2":   (jax.random.normal(ks[7], (1, d_model), jnp.float32) * s),
        "g1":   jnp.ones((1, d_model), jnp.float32),
        "be1":  jnp.zeros((1, d_model), jnp.float32),
        "g2":   jnp.ones((1, d_model), jnp.float32),
        "be2":  jnp.zeros((1, d_model), jnp.float32),
    }


if __name__ == "__main__":
    # Small but TPU-friendly shapes (E multiple of 128 -> lane-dense stores,
    # S multiple of 8), consistent with a scaled-down DETR encoder; (S, B, E).
    S, B, E = 16, 2, 128
    nhead, dim_ff, num_layers = 4, 256, 2

    key = jax.random.PRNGKey(0)
    k_src, k_pos, k_par = jax.random.split(key, 3)
    src = jax.random.normal(k_src, (S, B, E), jnp.float32)
    pos = jax.random.normal(k_pos, (S, B, E), jnp.float32)

    layer_keys = jax.random.split(k_par, num_layers)
    layer_params = [_init_layer_params(lk, E, nhead, dim_ff) for lk in layer_keys]

    out = transformer_encoder_pallas(src, pos, layer_params, nhead, batch_block=1)
    out = jax.block_until_ready(out)

    ref = _ref_encoder(src, pos, layer_params, nhead)
    assert out.shape == (S, B, E)
    # Tolerance accounts for bf16 MXU matmul inputs (f32 accumulation) vs the
    # full-f32 reference; semantic bugs would produce errors far above this.
    assert jnp.allclose(out, ref, atol=2e-2, rtol=2e-2), "mismatch vs JAX reference"

    print("KERNEL_OK")
</pallas_src>

<mosaic_0001>
module attributes {stable_mosaic.version = 11 : i64} {
  func.func @encoder_stack_kernel(%arg0: i32, %arg1: i32, %arg2: memref<1x16x128xf32, #tpu.memory_space<vmem>>, %arg3: memref<1x16x128xf32, #tpu.memory_space<vmem>>, %arg4: memref<1x128x256xbf16, #tpu.memory_space<vmem>>, %arg5: memref<1x128x128xbf16, #tpu.memory_space<vmem>>, %arg6: memref<1x4x32x128xbf16, #tpu.memory_space<vmem>>, %arg7: memref<1x128x256xbf16, #tpu.memory_space<vmem>>, %arg8: memref<1x256x128xbf16, #tpu.memory_space<vmem>>, %arg9: memref<1x9x256xf32, #tpu.memory_space<vmem>>, %arg10: memref<1x16x128xf32, #tpu.memory_space<vmem>>, %arg11: memref<1x16x128xf32, #tpu.memory_space<vmem>>) attributes {dimension_semantics = [#tpu.dimension_semantics<parallel>, #tpu.dimension_semantics<arbitrary>], iteration_bounds = array<i64: 2, 2>, scalar_prefetch = 0 : i64, scratch_operands = 1 : i64, tpu.core_type = #tpu.core_type<tc>, window_params = [{transform_indices = @transform_0, window_bounds = array<i64: 1, 16, 128>}, {transform_indices = @transform_1, window_bounds = array<i64: 1, 16, 128>}, {transform_indices = @transform_2, window_bounds = array<i64: 1, 128, 256>}, {transform_indices = @transform_3, window_bounds = array<i64: 1, 128, 128>}, {transform_indices = @transform_4, window_bounds = array<i64: 1, 4, 32, 128>}, {transform_indices = @transform_5, window_bounds = array<i64: 1, 128, 256>}, {transform_indices = @transform_6, window_bounds = array<i64: 1, 256, 128>}, {transform_indices = @transform_7, window_bounds = array<i64: 1, 9, 256>}, {transform_indices = @transform_8, window_bounds = array<i64: 1, 16, 128>}]} {
    %c0_i32 = arith.constant 0 : i32
    %0 = arith.cmpi eq, %arg1, %c0_i32 : i32
    %1 = arith.extui %0 : i1 to i32
    %c0_i32_0 = arith.constant 0 : i32
    %2 = arith.cmpi ne, %1, %c0_i32_0 : i32
    scf.if %2 {
      %c0_71 = arith.constant 0 : index
      %c0_72 = arith.constant 0 : index
      %c0_73 = arith.constant 0 : index
      %213 = vector.load %arg2[%c0_71, %c0_72, %c0_73] : memref<1x16x128xf32, #tpu.memory_space<vmem>>, vector<1x16x128xf32>
      %c0_74 = arith.constant 0 : index
      %c0_75 = arith.constant 0 : index
      %c0_76 = arith.constant 0 : index
      %214 = vector.load %arg11[%c0_74, %c0_75, %c0_76] : memref<1x16x128xf32, #tpu.memory_space<vmem>>, vector<1x16x128xf32>
      tpu.vector_store %arg11[%c0_74, %c0_75, %c0_76], %213 {strides = array<i32>} : memref<1x16x128xf32, #tpu.memory_space<vmem>>, vector<1x16x128xf32>,
    } else {
    }
    %c0 = arith.constant 0 : index
    %c0_1 = arith.constant 0 : index
    %c0_2 = arith.constant 0 : index
    %3 = vector.load %arg11[%c0, %c0_1, %c0_2] : memref<1x16x128xf32, #tpu.memory_space<vmem>>, vector<1x16x128xf32>
    %c0_3 = arith.constant 0 : index
    %c0_4 = arith.constant 0 : index
    %c0_5 = arith.constant 0 : index
    %4 = vector.load %arg3[%c0_3, %c0_4, %c0_5] : memref<1x16x128xf32, #tpu.memory_space<vmem>>, vector<1x16x128xf32>
    %c0_6 = arith.constant 0 : index
    %c0_7 = arith.constant 0 : index
    %c0_8 = arith.constant 0 : index
    %5 = vector.load %arg9[%c0_6, %c0_7, %c0_8] : memref<1x9x256xf32, #tpu.memory_space<vmem>>, vector<1x9x256xf32>
    %6 = vector.shape_cast %5 : vector<1x9x256xf32> to vector<9x256xf32>
    %7 = vector.extract_strided_slice %6 {offsets = [0, 0], sizes = [1, 256], strides = [1, 1]} : vector<9x256xf32> to vector<1x256xf32>
    %8 = vector.shape_cast %7 : vector<1x256xf32> to vector<256xf32>
    %9 = vector.extract_strided_slice %6 {offsets = [1, 0], sizes = [1, 128], strides = [1, 1]} : vector<9x256xf32> to vector<1x128xf32>
    %10 = vector.shape_cast %9 : vector<1x128xf32> to vector<128xf32>
    %11 = vector.extract_strided_slice %6 {offsets = [2, 0], sizes = [1, 128], strides = [1, 1]} : vector<9x256xf32> to vector<1x128xf32>
    %12 = vector.shape_cast %11 : vector<1x128xf32> to vector<128xf32>
    %13 = vector.extract_strided_slice %6 {offsets = [3, 0], sizes = [1, 256], strides = [1, 1]} : vector<9x256xf32> to vector<1x256xf32>
    %14 = vector.shape_cast %13 : vector<1x256xf32> to vector<256xf32>
    %15 = vector.extract_strided_slice %6 {offsets = [4, 0], sizes = [1, 128], strides = [1, 1]} : vector<9x256xf32> to vector<1x128xf32>
    %16 = vector.shape_cast %15 : vector<1x128xf32> to vector<128xf32>
    %17 = vector.extract_strided_slice %6 {offsets = [5, 0], sizes = [1, 128], strides = [1, 1]} : vector<9x256xf32> to vector<1x128xf32>
    %18 = vector.shape_cast %17 : vector<1x128xf32> to vector<128xf32>
    %19 = vector.extract_strided_slice %6 {offsets = [6, 0], sizes = [1, 128], strides = [1, 1]} : vector<9x256xf32> to vector<1x128xf32>
    %20 = vector.shape_cast %19 : vector<1x128xf32> to vector<128xf32>
    %21 = vector.extract_strided_slice %6 {offsets = [7, 0], sizes = [1, 128], strides = [1, 1]} : vector<9x256xf32> to vector<1x128xf32>
    %22 = vector.shape_cast %21 : vector<1x128xf32> to vector<128xf32>
    %23 = vector.extract_strided_slice %6 {offsets = [8, 0], sizes = [1, 128], strides = [1, 1]} : vector<9x256xf32> to vector<1x128xf32>
    %24 = vector.shape_cast %23 : vector<1x128xf32> to vector<128xf32>
    %25 = vector.shape_cast %3 : vector<1x16x128xf32> to vector<16x128xf32>
    %26 = arith.addf %3, %4 : vector<1x16x128xf32>
    %27 = vector.shape_cast %26 : vector<1x16x128xf32> to vector<16x128xf32>
    %28 = arith.truncf %27 : vector<16x128xf32> to vector<16x128xbf16>
    %29 = arith.truncf %25 : vector<16x128xf32> to vector<16x128xbf16>
    %c0_9 = arith.constant 0 : index
    %c0_10 = arith.constant 0 : index
    %c0_11 = arith.constant 0 : index
    %30 = vector.load %arg4[%c0_9, %c0_10, %c0_11] : memref<1x128x256xbf16, #tpu.memory_space<vmem>>, vector<1x128x256xbf16>
    %31 = vector.shape_cast %30 : vector<1x128x256xbf16> to vector<128x256xbf16>
    %cst = arith.constant dense<0.000000e+00> : vector<16x256xf32>
    %32 = tpu.matmul %28, %31, %cst {dimension_numbers = #tpu.dot_dimension_numbers<[1], [0], [0], [1], [0, 0, 1, 1], [], []>} : vector<16x128xbf16>, vector<128x256xbf16>, vector<16x256xf32> -> vector<16x256xf32>
    %33 = vector.shape_cast %8 : vector<256xf32> to vector<1x256xf32>
    %34 = vector.broadcast %33 : vector<1x256xf32> to vector<16x256xf32>
    %35 = arith.addf %32, %34 : vector<16x256xf32>
    %c0_12 = arith.constant 0 : index
    %c0_13 = arith.constant 0 : index
    %c0_14 = arith.constant 0 : index
    %36 = vector.load %arg5[%c0_12, %c0_13, %c0_14] : memref<1x128x128xbf16, #tpu.memory_space<vmem>>, vector<1x128x128xbf16>
    %37 = vector.shape_cast %36 : vector<1x128x128xbf16> to vector<128x128xbf16>
    %cst_15 = arith.constant dense<0.000000e+00> : vector<16x128xf32>
    %38 = tpu.matmul %29, %37, %cst_15 {dimension_numbers = #tpu.dot_dimension_numbers<[1], [0], [0], [1], [0, 0, 1, 1], [], []>} : vector<16x128xbf16>, vector<128x128xbf16>, vector<16x128xf32> -> vector<16x128xf32>
    %39 = vector.shape_cast %10 : vector<128xf32> to vector<1x128xf32>
    %40 = vector.broadcast %39 : vector<1x128xf32> to vector<16x128xf32>
    %41 = arith.addf %38, %40 : vector<16x128xf32>
    %42 = vector.extract_strided_slice %35 {offsets = [0, 0], sizes = [16, 128], strides = [1, 1]} : vector<16x256xf32> to vector<16x128xf32>
    %43 = vector.shape_cast %42 : vector<16x128xf32> to vector<1x16x128xf32>
    %44 = arith.truncf %43 : vector<1x16x128xf32> to vector<1x16x128xbf16>
    %45 = vector.extract_strided_slice %35 {offsets = [0, 128], sizes = [16, 128], strides = [1, 1]} : vector<16x256xf32> to vector<16x128xf32>
    %46 = vector.shape_cast %45 : vector<16x128xf32> to vector<1x16x128xf32>
    %47 = arith.truncf %46 : vector<1x16x128xf32> to vector<1x16x128xbf16>
    %48 = vector.shape_cast %41 : vector<16x128xf32> to vector<1x16x128xf32>
    %49 = arith.truncf %48 : vector<1x16x128xf32> to vector<1x16x128xbf16>
    %50 = vector.extract_strided_slice %44 {offsets = [0, 0, 0], sizes = [1, 16, 32], strides = [1, 1, 1]} : vector<1x16x128xbf16> to vector<1x16x32xbf16>
    %51 = vector.extract_strided_slice %47 {offsets = [0, 0, 0], sizes = [1, 16, 32], strides = [1, 1, 1]} : vector<1x16x128xbf16> to vector<1x16x32xbf16>
    %52 = vector.extract_strided_slice %49 {offsets = [0, 0, 0], sizes = [1, 16, 32], strides = [1, 1, 1]} : vector<1x16x128xbf16> to vector<1x16x32xbf16>
    "tpu.trace_start"() <{level = 10 : i32, message = "bqd,bkd->bqk"}> : () -> ()
    %cst_16 = arith.constant dense<0.000000e+00> : vector<1x16x16xf32>
    %53 = tpu.matmul %50, %51, %cst_16 {dimension_numbers = #tpu.dot_dimension_numbers<[2], [2], [1], [1], [0, 0, 0, 1, 1, 1], [0], [0]>} : vector<1x16x32xbf16>, vector<1x16x32xbf16>, vector<1x16x16xf32> -> vector<1x16x16xf32>
    "tpu.trace_stop"() : () -> ()
    %cst_17 = arith.constant dense<0xFF800000> : vector<1x16xf32>
    %54 = vector.multi_reduction <maximumf>, %53, %cst_17 [2] : vector<1x16x16xf32> to vector<1x16xf32>
    %55 = vector.shape_cast %54 : vector<1x16xf32> to vector<1x16x1xf32>
    %56 = vector.broadcast %55 : vector<1x16x1xf32> to vector<1x16x16xf32>
    %57 = arith.subf %53, %56 : vector<1x16x16xf32>
    %58 = math.exp %57 : vector<1x16x16xf32>
    %cst_18 = arith.constant dense<0.000000e+00> : vector<1x16xf32>
    %59 = vector.multi_reduction <add>, %58, %cst_18 [2] : vector<1x16x16xf32> to vector<1x16xf32>
    %60 = vector.shape_cast %59 : vector<1x16xf32> to vector<1x16x1xf32>
    %61 = tpu.reciprocal %60 {approx = true} : vector<1x16x1xf32> -> vector<1x16x1xf32>
    %62 = vector.broadcast %61 : vector<1x16x1xf32> to vector<1x16x16xf32>
    %63 = arith.mulf %58, %62 : vector<1x16x16xf32>
    %64 = arith.truncf %63 : vector<1x16x16xf32> to vector<1x16x16xbf16>
    "tpu.trace_start"() <{level = 10 : i32, message = "bqk,bkd->bqd"}> : () -> ()
    %cst_19 = arith.constant dense<0.000000e+00> : vector<1x16x32xf32>
    %65 = tpu.matmul %64, %52, %cst_19 {dimension_numbers = #tpu.dot_dimension_numbers<[2], [1], [1], [2], [0, 0, 0, 1, 1, 2], [0], [0]>} : vector<1x16x16xbf16>, vector<1x16x32xbf16>, vector<1x16x32xf32> -> vector<1x16x32xf32>
    "tpu.trace_stop"() : () -> ()
    %66 = vector.shape_cast %65 : vector<1x16x32xf32> to vector<16x32xf32>
    %67 = arith.truncf %66 : vector<16x32xf32> to vector<16x32xbf16>
    %c0_20 = arith.constant 0 : index
    %c0_21 = arith.constant 0 : index
    %c0_22 = arith.constant 0 : index
    %c0_23 = arith.constant 0 : index
    %68 = vector.load %arg6[%c0_20, %c0_21, %c0_22, %c0_23] : memref<1x4x32x128xbf16, #tpu.memory_space<vmem>>, vector<1x1x32x128xbf16>
    %69 = vector.shape_cast %68 : vector<1x1x32x128xbf16> to vector<32x128xbf16>
    %cst_24 = arith.constant dense<0.000000e+00> : vector<16x128xf32>
    %70 = tpu.matmul %67, %69, %cst_24 {dimension_numbers = #tpu.dot_dimension_numbers<[1], [0], [0], [1], [0, 0, 1, 1], [], []>} : vector<16x32xbf16>, vector<32x128xbf16>, vector<16x128xf32> -> vector<16x128xf32>
    %71 = vector.extract_strided_slice %44 {offsets = [0, 0, 32], sizes = [1, 16, 32], strides = [1, 1, 1]} : vector<1x16x128xbf16> to vector<1x16x32xbf16>
    %72 = vector.extract_strided_slice %47 {offsets = [0, 0, 32], sizes = [1, 16, 32], strides = [1, 1, 1]} : vector<1x16x128xbf16> to vector<1x16x32xbf16>
    %73 = vector.extract_strided_slice %49 {offsets = [0, 0, 32], sizes = [1, 16, 32], strides = [1, 1, 1]} : vector<1x16x128xbf16> to vector<1x16x32xbf16>
    "tpu.trace_start"() <{level = 10 : i32, message = "bqd,bkd->bqk"}> : () -> ()
    %cst_25 = arith.constant dense<0.000000e+00> : vector<1x16x16xf32>
    %74 = tpu.matmul %71, %72, %cst_25 {dimension_numbers = #tpu.dot_dimension_numbers<[2], [2], [1], [1], [0, 0, 0, 1, 1, 1], [0], [0]>} : vector<1x16x32xbf16>, vector<1x16x32xbf16>, vector<1x16x16xf32> -> vector<1x16x16xf32>
    "tpu.trace_stop"() : () -> ()
    %cst_26 = arith.constant dense<0xFF800000> : vector<1x16xf32>
    %75 = vector.multi_reduction <maximumf>, %74, %cst_26 [2] : vector<1x16x16xf32> to vector<1x16xf32>
    %76 = vector.shape_cast %75 : vector<1x16xf32> to vector<1x16x1xf32>
    %77 = vector.broadcast %76 : vector<1x16x1xf32> to vector<1x16x16xf32>
    %78 = arith.subf %74, %77 : vector<1x16x16xf32>
    %79 = math.exp %78 : vector<1x16x16xf32>
    %cst_27 = arith.constant dense<0.000000e+00> : vector<1x16xf32>
    %80 = vector.multi_reduction <add>, %79, %cst_27 [2] : vector<1x16x16xf32> to vector<1x16xf32>
    %81 = vector.shape_cast %80 : vector<1x16xf32> to vector<1x16x1xf32>
    %82 = tpu.reciprocal %81 {approx = true} : vector<1x16x1xf32> -> vector<1x16x1xf32>
    %83 = vector.broadcast %82 : vector<1x16x1xf32> to vector<1x16x16xf32>
    %84 = arith.mulf %79, %83 : vector<1x16x16xf32>
    %85 = arith.truncf %84 : vector<1x16x16xf32> to vector<1x16x16xbf16>
    "tpu.trace_start"() <{level = 10 : i32, message = "bqk,bkd->bqd"}> : () -> ()
    %cst_28 = arith.constant dense<0.000000e+00> : vector<1x16x32xf32>
    %86 = tpu.matmul %85, %73, %cst_28 {dimension_numbers = #tpu.dot_dimension_numbers<[2], [1], [1], [2], [0, 0, 0, 1, 1, 2], [0], [0]>} : vector<1x16x16xbf16>, vector<1x16x32xbf16>, vector<1x16x32xf32> -> vector<1x16x32xf32>
    "tpu.trace_stop"() : () -> ()
    %87 = vector.shape_cast %86 : vector<1x16x32xf32> to vector<16x32xf32>
    %88 = arith.truncf %87 : vector<16x32xf32> to vector<16x32xbf16>
    %c0_29 = arith.constant 0 : index
    %c1 = arith.constant 1 : index
    %c0_30 = arith.constant 0 : index
    %c0_31 = arith.constant 0 : index
    %89 = vector.load %arg6[%c0_29, %c1, %c0_30, %c0_31] : memref<1x4x32x128xbf16, #tpu.memory_space<vmem>>, vector<1x1x32x128xbf16>
    %90 = vector.shape_cast %89 : vector<1x1x32x128xbf16> to vector<32x128xbf16>
    %cst_32 = arith.constant dense<0.000000e+00> : vector<16x128xf32>
    %91 = tpu.matmul %88, %90, %cst_32 {dimension_numbers = #tpu.dot_dimension_numbers<[1], [0], [0], [1], [0, 0, 1, 1], [], []>} : vector<16x32xbf16>, vector<32x128xbf16>, vector<16x128xf32> -> vector<16x128xf32>
    %92 = arith.addf %70, %91 : vector<16x128xf32>
    %93 = vector.extract_strided_slice %44 {offsets = [0, 0, 64], sizes = [1, 16, 32], strides = [1, 1, 1]} : vector<1x16x128xbf16> to vector<1x16x32xbf16>
    %94 = vector.extract_strided_slice %47 {offsets = [0, 0, 64], sizes = [1, 16, 32], strides = [1, 1, 1]} : vector<1x16x128xbf16> to vector<1x16x32xbf16>
    %95 = vector.extract_strided_slice %49 {offsets = [0, 0, 64], sizes = [1, 16, 32], strides = [1, 1, 1]} : vector<1x16x128xbf16> to vector<1x16x32xbf16>
    "tpu.trace_start"() <{level = 10 : i32, message = "bqd,bkd->bqk"}> : () -> ()
    %cst_33 = arith.constant dense<0.000000e+00> : vector<1x16x16xf32>
    %96 = tpu.matmul %93, %94, %cst_33 {dimension_numbers = #tpu.dot_dimension_numbers<[2], [2], [1], [1], [0, 0, 0, 1, 1, 1], [0], [0]>} : vector<1x16x32xbf16>, vector<1x16x32xbf16>, vector<1x16x16xf32> -> vector<1x16x16xf32>
    "tpu.trace_stop"() : () -> ()
    %cst_34 = arith.constant dense<0xFF800000> : vector<1x16xf32>
    %97 = vector.multi_reduction <maximumf>, %96, %cst_34 [2] : vector<1x16x16xf32> to vector<1x16xf32>
    %98 = vector.shape_cast %97 : vector<1x16xf32> to vector<1x16x1xf32>
    %99 = vector.broadcast %98 : vector<1x16x1xf32> to vector<1x16x16xf32>
    %100 = arith.subf %96, %99 : vector<1x16x16xf32>
    %101 = math.exp %100 : vector<1x16x16xf32>
    %cst_35 = arith.constant dense<0.000000e+00> : vector<1x16xf32>
    %102 = vector.multi_reduction <add>, %101, %cst_35 [2] : vector<1x16x16xf32> to vector<1x16xf32>
    %103 = vector.shape_cast %102 : vector<1x16xf32> to vector<1x16x1xf32>
    %104 = tpu.reciprocal %103 {approx = true} : vector<1x16x1xf32> -> vector<1x16x1xf32>
    %105 = vector.broadcast %104 : vector<1x16x1xf32> to vector<1x16x16xf32>
    %106 = arith.mulf %101, %105 : vector<1x16x16xf32>
    %107 = arith.truncf %106 : vector<1x16x16xf32> to vector<1x16x16xbf16>
    "tpu.trace_start"() <{level = 10 : i32, message = "bqk,bkd->bqd"}> : () -> ()
    %cst_36 = arith.constant dense<0.000000e+00> : vector<1x16x32xf32>
    %108 = tpu.matmul %107, %95, %cst_36 {dimension_numbers = #tpu.dot_dimension_numbers<[2], [1], [1], [2], [0, 0, 0, 1, 1, 2], [0], [0]>} : vector<1x16x16xbf16>, vector<1x16x32xbf16>, vector<1x16x32xf32> -> vector<1x16x32xf32>
    "tpu.trace_stop"() : () -> ()
    %109 = vector.shape_cast %108 : vector<1x16x32xf32> to vector<16x32xf32>
    %110 = arith.truncf %109 : vector<16x32xf32> to vector<16x32xbf16>
    %c0_37 = arith.constant 0 : index
    %c2 = arith.constant 2 : index
    %c0_38 = arith.constant 0 : index
    %c0_39 = arith.constant 0 : index
    %111 = vector.load %arg6[%c0_37, %c2, %c0_38, %c0_39] : memref<1x4x32x128xbf16, #tpu.memory_space<vmem>>, vector<1x1x32x128xbf16>
    %112 = vector.shape_cast %111 : vector<1x1x32x128xbf16> to vector<32x128xbf16>
    %cst_40 = arith.constant dense<0.000000e+00> : vector<16x128xf32>
    %113 = tpu.matmul %110, %112, %cst_40 {dimension_numbers = #tpu.dot_dimension_numbers<[1], [0], [0], [1], [0, 0, 1, 1], [], []>} : vector<16x32xbf16>, vector<32x128xbf16>, vector<16x128xf32> -> vector<16x128xf32>
    %114 = arith.addf %92, %113 : vector<16x128xf32>
    %115 = vector.extract_strided_slice %44 {offsets = [0, 0, 96], sizes = [1, 16, 32], strides = [1, 1, 1]} : vector<1x16x128xbf16> to vector<1x16x32xbf16>
    %116 = vector.extract_strided_slice %47 {offsets = [0, 0, 96], sizes = [1, 16, 32], strides = [1, 1, 1]} : vector<1x16x128xbf16> to vector<1x16x32xbf16>
    %117 = vector.extract_strided_slice %49 {offsets = [0, 0, 96], sizes = [1, 16, 32], strides = [1, 1, 1]} : vector<1x16x128xbf16> to vector<1x16x32xbf16>
    "tpu.trace_start"() <{level = 10 : i32, message = "bqd,bkd->bqk"}> : () -> ()
    %cst_41 = arith.constant dense<0.000000e+00> : vector<1x16x16xf32>
    %118 = tpu.matmul %115, %116, %cst_41 {dimension_numbers = #tpu.dot_dimension_numbers<[2], [2], [1], [1], [0, 0, 0, 1, 1, 1], [0], [0]>} : vector<1x16x32xbf16>, vector<1x16x32xbf16>, vector<1x16x16xf32> -> vector<1x16x16xf32>
    "tpu.trace_stop"() : () -> ()
    %cst_42 = arith.constant dense<0xFF800000> : vector<1x16xf32>
    %119 = vector.multi_reduction <maximumf>, %118, %cst_42 [2] : vector<1x16x16xf32> to vector<1x16xf32>
    %120 = vector.shape_cast %119 : vector<1x16xf32> to vector<1x16x1xf32>
    %121 = vector.broadcast %120 : vector<1x16x1xf32> to vector<1x16x16xf32>
    %122 = arith.subf %118, %121 : vector<1x16x16xf32>
    %123 = math.exp %122 : vector<1x16x16xf32>
    %cst_43 = arith.constant dense<0.000000e+00> : vector<1x16xf32>
    %124 = vector.multi_reduction <add>, %123, %cst_43 [2] : vector<1x16x16xf32> to vector<1x16xf32>
    %125 = vector.shape_cast %124 : vector<1x16xf32> to vector<1x16x1xf32>
    %126 = tpu.reciprocal %125 {approx = true} : vector<1x16x1xf32> -> vector<1x16x1xf32>
    %127 = vector.broadcast %126 : vector<1x16x1xf32> to vector<1x16x16xf32>
    %128 = arith.mulf %123, %127 : vector<1x16x16xf32>
    %129 = arith.truncf %128 : vector<1x16x16xf32> to vector<1x16x16xbf16>
    "tpu.trace_start"() <{level = 10 : i32, message = "bqk,bkd->bqd"}> : () -> ()
    %cst_44 = arith.constant dense<0.000000e+00> : vector<1x16x32xf32>
    %130 = tpu.matmul %129, %117, %cst_44 {dimension_numbers = #tpu.dot_dimension_numbers<[2], [1], [1], [2], [0, 0, 0, 1, 1, 2], [0], [0]>} : vector<1x16x16xbf16>, vector<1x16x32xbf16>, vector<1x16x32xf32> -> vector<1x16x32xf32>
    "tpu.trace_stop"() : () -> ()
    %131 = vector.shape_cast %130 : vector<1x16x32xf32> to vector<16x32xf32>
    %132 = arith.truncf %131 : vector<16x32xf32> to vector<16x32xbf16>
    %c0_45 = arith.constant 0 : index
    %c3 = arith.constant 3 : index
    %c0_46 = arith.constant 0 : index
    %c0_47 = arith.constant 0 : index
    %133 = vector.load %arg6[%c0_45, %c3, %c0_46, %c0_47] : memref<1x4x32x128xbf16, #tpu.memory_space<vmem>>, vector<1x1x32x128xbf16>
    %134 = vector.shape_cast %133 : vector<1x1x32x128xbf16> to vector<32x128xbf16>
    %cst_48 = arith.constant dense<0.000000e+00> : vector<16x128xf32>
    %135 = tpu.matmul %132, %134, %cst_48 {dimension_numbers = #tpu.dot_dimension_numbers<[1], [0], [0], [1], [0, 0, 1, 1], [], []>} : vector<16x32xbf16>, vector<32x128xbf16>, vector<16x128xf32> -> vector<16x128xf32>
    %136 = arith.addf %114, %135 : vector<16x128xf32>
    %137 = vector.shape_cast %12 : vector<128xf32> to vector<1x128xf32>
    %138 = vector.broadcast %137 : vector<1x128xf32> to vector<16x128xf32>
    %139 = arith.addf %136, %138 : vector<16x128xf32>
    %140 = arith.addf %25, %139 : vector<16x128xf32>
    %cst_49 = arith.constant dense<0.000000e+00> : vector<16xf32>
    %141 = vector.multi_reduction <add>, %140, %cst_49 [1] : vector<16x128xf32> to vector<16xf32>
    %142 = vector.shape_cast %141 : vector<16xf32> to vector<16x1xf32>
    %cst_50 = arith.constant 1.280000e+02 : f32
    %143 = vector.broadcast %cst_50 : f32 to vector<16x1xf32>
    %144 = arith.divf %142, %143 : vector<16x1xf32>
    %145 = vector.broadcast %144 : vector<16x1xf32> to vector<16x128xf32>
    %146 = arith.subf %140, %145 : vector<16x128xf32>
    %147 = arith.mulf %146, %146 : vector<16x128xf32>
    %cst_51 = arith.constant dense<0.000000e+00> : vector<16xf32>
    %148 = vector.multi_reduction <add>, %147, %cst_51 [1] : vector<16x128xf32> to vector<16xf32>
    %149 = vector.shape_cast %148 : vector<16xf32> to vector<16x1xf32>
    %cst_52 = arith.constant 1.280000e+02 : f32
    %150 = vector.broadcast %cst_52 : f32 to vector<16x1xf32>
    %151 = arith.divf %149, %150 : vector<16x1xf32>
    %152 = vector.broadcast %144 : vector<16x1xf32> to vector<16x128xf32>
    %153 = arith.subf %140, %152 : vector<16x128xf32>
    %cst_53 = arith.constant 9.99999974E-6 : f32
    %154 = vector.broadcast %cst_53 : f32 to vector<16x1xf32>
    %155 = arith.addf %151, %154 : vector<16x1xf32>
    %156 = math.rsqrt %155 : vector<16x1xf32>
    %157 = vector.broadcast %156 : vector<16x1xf32> to vector<16x128xf32>
    %158 = arith.mulf %153, %157 : vector<16x128xf32>
    %159 = vector.shape_cast %18 : vector<128xf32> to vector<1x128xf32>
    %160 = vector.broadcast %159 : vector<1x128xf32> to vector<16x128xf32>
    %161 = arith.mulf %158, %160 : vector<16x128xf32>
    %162 = vector.shape_cast %20 : vector<128xf32> to vector<1x128xf32>
    %163 = vector.broadcast %162 : vector<1x128xf32> to vector<16x128xf32>
    %164 = arith.addf %161, %163 : vector<16x128xf32>
    %165 = arith.truncf %164 : vector<16x128xf32> to vector<16x128xbf16>
    %c0_54 = arith.constant 0 : index
    %c0_55 = arith.constant 0 : index
    %c0_56 = arith.constant 0 : index
    %166 = vector.load %arg7[%c0_54, %c0_55, %c0_56] : memref<1x128x256xbf16, #tpu.memory_space<vmem>>, vector<1x128x256xbf16>
    %167 = vector.shape_cast %166 : vector<1x128x256xbf16> to vector<128x256xbf16>
    %cst_57 = arith.constant dense<0.000000e+00> : vector<16x256xf32>
    %168 = tpu.matmul %165, %167, %cst_57 {dimension_numbers = #tpu.dot_dimension_numbers<[1], [0], [0], [1], [0, 0, 1, 1], [], []>} : vector<16x128xbf16>, vector<128x256xbf16>, vector<16x256xf32> -> vector<16x256xf32>
    %169 = vector.shape_cast %14 : vector<256xf32> to vector<1x256xf32>
    %170 = vector.broadcast %169 : vector<1x256xf32> to vector<16x256xf32>
    %171 = arith.addf %168, %170 : vector<16x256xf32>
    %cst_58 = arith.constant 0.000000e+00 : f32
    %172 = vector.broadcast %cst_58 : f32 to vector<16x256xf32>
    %173 = arith.maximumf %171, %172 : vector<16x256xf32>
    %174 = arith.truncf %173 : vector<16x256xf32> to vector<16x256xbf16>
    %c0_59 = arith.constant 0 : index
    %c0_60 = arith.constant 0 : index
    %c0_61 = arith.constant 0 : index
    %175 = vector.load %arg8[%c0_59, %c0_60, %c0_61] : memref<1x256x128xbf16, #tpu.memory_space<vmem>>, vector<1x256x128xbf16>
    %176 = vector.shape_cast %175 : vector<1x256x128xbf16> to vector<256x128xbf16>
    %cst_62 = arith.constant dense<0.000000e+00> : vector<16x128xf32>
    %177 = tpu.matmul %174, %176, %cst_62 {dimension_numbers = #tpu.dot_dimension_numbers<[1], [0], [0], [1], [0, 0, 1, 1], [], []>} : vector<16x256xbf16>, vector<256x128xbf16>, vector<16x128xf32> -> vector<16x128xf32>
    %178 = vector.shape_cast %16 : vector<128xf32> to vector<1x128xf32>
    %179 = vector.broadcast %178 : vector<1x128xf32> to vector<16x128xf32>
    %180 = arith.addf %177, %179 : vector<16x128xf32>
    %181 = arith.addf %164, %180 : vector<16x128xf32>
    %cst_63 = arith.constant dense<0.000000e+00> : vector<16xf32>
    %182 = vector.multi_reduction <add>, %181, %cst_63 [1] : vector<16x128xf32> to vector<16xf32>
    %183 = vector.shape_cast %182 : vector<16xf32> to vector<16x1xf32>
    %cst_64 = arith.constant 1.280000e+02 : f32
    %184 = vector.broadcast %cst_64 : f32 to vector<16x1xf32>
    %185 = arith.divf %183, %184 : vector<16x1xf32>
    %186 = vector.broadcast %185 : vector<16x1xf32> to vector<16x128xf32>
    %187 = arith.subf %181, %186 : vector<16x128xf32>
    %188 = arith.mulf %187, %187 : vector<16x128xf32>
    %cst_65 = arith.constant dense<0.000000e+00> : vector<16xf32>
    %189 = vector.multi_reduction <add>, %188, %cst_65 [1] : vector<16x128xf32> to vector<16xf32>
    %190 = vector.shape_cast %189 : vector<16xf32> to vector<16x1xf32>
    %cst_66 = arith.constant 1.280000e+02 : f32
    %191 = vector.broadcast %cst_66 : f32 to vector<16x1xf32>
    %192 = arith.divf %190, %191 : vector<16x1xf32>
    %193 = vector.broadcast %185 : vector<16x1xf32> to vector<16x128xf32>
    %194 = arith.subf %181, %193 : vector<16x128xf32>
    %cst_67 = arith.constant 9.99999974E-6 : f32
    %195 = vector.broadcast %cst_67 : f32 to vector<16x1xf32>
    %196 = arith.addf %192, %195 : vector<16x1xf32>
    %197 = math.rsqrt %196 : vector<16x1xf32>
    %198 = vector.broadcast %197 : vector<16x1xf32> to vector<16x128xf32>
    %199 = arith.mulf %194, %198 : vector<16x128xf32>
    %200 = vector.shape_cast %22 : vector<128xf32> to vector<1x128xf32>
    %201 = vector.broadcast %200 : vector<1x128xf32> to vector<16x128xf32>
    %202 = arith.mulf %199, %201 : vector<16x128xf32>
    %203 = vector.shape_cast %24 : vector<128xf32> to vector<1x128xf32>
    %204 = vector.broadcast %203 : vector<1x128xf32> to vector<16x128xf32>
    %205 = arith.addf %202, %204 : vector<16x128xf32>
    %206 = vector.shape_cast %205 : vector<16x128xf32> to vector<1x16x128xf32>
    %c1_i32 = arith.constant 1 : i32
    %207 = arith.cmpi slt, %arg1, %c1_i32 : i32
    %208 = arith.extui %207 : i1 to i32
    %c0_i32_68 = arith.constant 0 : i32
    %209 = arith.cmpi ne, %208, %c0_i32_68 : i32
    scf.if %209 {
      %c0_71 = arith.constant 0 : index
      %c0_72 = arith.constant 0 : index
      %c0_73 = arith.constant 0 : index
      %213 = vector.load %arg11[%c0_71, %c0_72, %c0_73] : memref<1x16x128xf32, #tpu.memory_space<vmem>>, vector<1x16x128xf32>
      tpu.vector_store %arg11[%c0_71, %c0_72, %c0_73], %206 {strides = array<i32>} : memref<1x16x128xf32, #tpu.memory_space<vmem>>, vector<1x16x128xf32>,
    } else {
    }
    %c1_i32_69 = arith.constant 1 : i32
    %210 = arith.cmpi eq, %arg1, %c1_i32_69 : i32
    %211 = arith.extui %210 : i1 to i32
    %c0_i32_70 = arith.constant 0 : i32
    %212 = arith.cmpi ne, %211, %c0_i32_70 : i32
    scf.if %212 {
      %c0_71 = arith.constant 0 : index
      %c0_72 = arith.constant 0 : index
      %c0_73 = arith.constant 0 : index
      %213 = vector.load %arg10[%c0_71, %c0_72, %c0_73] : memref<1x16x128xf32, #tpu.memory_space<vmem>>, vector<1x16x128xf32>
      tpu.vector_store %arg10[%c0_71, %c0_72, %c0_73], %206 {strides = array<i32>} : memref<1x16x128xf32, #tpu.memory_space<vmem>>, vector<1x16x128xf32>,
    } else {
    }
    return
  }
  func.func @transform_0(%arg0: i32, %arg1: i32) -> (i32, i32, i32) {
    %c0_i32 = arith.constant 0 : i32
    %c0_i32_0 = arith.constant 0 : i32
    %c0_i32_1 = arith.constant 0 : i32
    return %arg0, %c0_i32, %c0_i32_0 : i32, i32, i32
  }
  func.func @transform_1(%arg0: i32, %arg1: i32) -> (i32, i32, i32) {
    %c0_i32 = arith.constant 0 : i32
    %c0_i32_0 = arith.constant 0 : i32
    %c0_i32_1 = arith.constant 0 : i32
    return %arg0, %c0_i32, %c0_i32_0 : i32, i32, i32
  }
  func.func @transform_2(%arg0: i32, %arg1: i32) -> (i32, i32, i32) {
    %c0_i32 = arith.constant 0 : i32
    %c0_i32_0 = arith.constant 0 : i32
    %c0_i32_1 = arith.constant 0 : i32
    return %arg1, %c0_i32, %c0_i32_0 : i32, i32, i32
  }
  func.func @transform_3(%arg0: i32, %arg1: i32) -> (i32, i32, i32) {
    %c0_i32 = arith.constant 0 : i32
    %c0_i32_0 = arith.constant 0 : i32
    %c0_i32_1 = arith.constant 0 : i32
    return %arg1, %c0_i32, %c0_i32_0 : i32, i32, i32
  }
  func.func @transform_4(%arg0: i32, %arg1: i32) -> (i32, i32, i32, i32) {
    %c0_i32 = arith.constant 0 : i32
    %c0_i32_0 = arith.constant 0 : i32
    %c0_i32_1 = arith.constant 0 : i32
    %c0_i32_2 = arith.constant 0 : i32
    return %arg1, %c0_i32, %c0_i32_0, %c0_i32_1 : i32, i32, i32, i32
  }
  func.func @transform_5(%arg0: i32, %arg1: i32) -> (i32, i32, i32) {
    %c0_i32 = arith.constant 0 : i32
    %c0_i32_0 = arith.constant 0 : i32
    %c0_i32_1 = arith.constant 0 : i32
    return %arg1, %c0_i32, %c0_i32_0 : i32, i32, i32
  }
  func.func @transform_6(%arg0: i32, %arg1: i32) -> (i32, i32, i32) {
    %c0_i32 = arith.constant 0 : i32
    %c0_i32_0 = arith.constant 0 : i32
    %c0_i32_1 = arith.constant 0 : i32
    return %arg1, %c0_i32, %c0_i32_0 : i32, i32, i32
  }
  func.func @transform_7(%arg0: i32, %arg1: i32) -> (i32, i32, i32) {
    %c0_i32 = arith.constant 0 : i32
    %c0_i32_0 = arith.constant 0 : i32
    %c0_i32_1 = arith.constant 0 : i32
    return %arg1, %c0_i32, %c0_i32_0 : i32, i32, i32
  }
  func.func @transform_8(%arg0: i32, %arg1: i32) -> (i32, i32, i32) {
    %c0_i32 = arith.constant 0 : i32
    %c0_i32_0 = arith.constant 0 : i32
    %c0_i32_1 = arith.constant 0 : i32
    return %arg0, %c0_i32, %c0_i32_0 : i32, i32, i32
  }
}

</mosaic_0001>

<bundles_post_ra>
// kernel: tpu_custom_call.1
= control target key start
LH: loop header
LB: loop body
LE: loop exit
PB: predicated region body
PF: predicated region fallthrough
CT: control target
= control target key end

     0   :  { %s3768_s0 = inlined_call_operand.vmem [shape: f32[2,16,128], index: 0, kind: input, shape index: {}]   ;;  %s3769_s1 = inlined_call_operand.vmem [shape: f32[2,16,128], index: 1, kind: input, shape index: {}]   ;;  %s3770_s2 = inlined_call_operand.hbm [shape: bf16[2,128,256], index: 2, kind: input, shape index: {}]   ;;  %s3771_s3 = inlined_call_operand.hbm [shape: bf16[2,128,128], index: 3, kind: input, shape index: {}]   ;;  %s3772_s4 = inlined_call_operand.hbm [shape: bf16[2,4,32,128], index: 4, kind: input, shape index: {}]   ;;  %s3773_s5 = inlined_call_operand.hbm [shape: bf16[2,128,256], index: 5, kind: input, shape index: {}]   ;;  %s3774_s6 = inlined_call_operand.hbm [shape: bf16[2,256,128], index: 6, kind: input, shape index: {}]   ;;  %s3775_s7 = inlined_call_operand.vmem [shape: f32[2,9,256], index: 7, kind: input, shape index: {}]   ;;  %s3776_s8 = inlined_call_operand.hbm [shape: f32[2,16,128], index: 8, kind: output, shape index: {}]  }
   0x1   :  { %3802 = sst [smem:[#allocation30_spill]] %s3768_s0 }
   0x2   :  { %3803 = sst [smem:[#allocation31_spill]] %s3769_s1 }
   0x3   :  { %3804 = sst [smem:[#allocation32_spill]] %s3771_s3 }
   0x4   :  { %3805 = sst [smem:[#allocation33_spill]] %s3773_s5 }
   0x5   :  { %3806 = sst [smem:[#allocation34_spill]] %s3775_s7 }
   0x6   :  { %3807 = sst [smem:[#allocation35_spill]] %s3776_s8 }
   0x7   :  { %13 = vsyncpa [#allocation4], 0 }
   0x8   :  { %15 = vsyncpa [#allocation4 + $0x1], 0 }
   0x9   :  { %16 = vsyncpa [#allocation7], 0 }
   0xa   :  { %18 = vsyncpa [#allocation7 + $0x1], 0 }
   0xb   :  { %19 = vsyncpa [#allocation10], 0 }
   0xc   :  { %21 = vsyncpa [#allocation10 + $0x1], 0 }
   0xd   :  { %22 = vsyncpa [#allocation5], 0 }
   0xe   :  { %24 = vsyncpa [#allocation5 + $0x1], 0  ;;  %s3096_s27 = smov 0   ;;  %s3098_s28 = smov 0  }
   0xf   :  { %s3100_s29 = smov 0   ;;  %s3102_s30 = smov 0  }
  0x10   :  { %s3104_s9 = smov 0   ;;  %s3106_s10 = smov 0  }
  0x11   :  { %s3108_s11 = smov 0   ;;  %s3110_s12 = smov 0  }
  0x12   :  { %s3112_s13 = smov 0   ;;  %s3114_s14 = smov 0  }
  0x13   :  { %s3116_s15 = smov 0  }
  0x14 LB: > { %3808 = sst [smem:[#allocation17_spill]] %s2991_s27  ;;  %s3150_s16 = sadd.s32 4294967295, %s3031_s15   ;;  %s3031_s15 = sphi %s3116_s15, %s30_s15   ;;  %s3027_s14 = sphi %s3114_s14, %s3861_s14   ;;  %s3023_s13 = sphi %s3112_s13, %s3860_s13   ;;  %s3019_s12 = sphi %s3110_s12, %s3859_s12   ;;  %s3015_s11 = sphi %s3108_s11, %s3858_s11   ;;  %s3011_s10 = sphi %s3106_s10, %s3857_s10   ;;  %s3007_s9 = sphi %s3104_s9, %s3865_s9   ;;  %s3003_s30 = sphi %s3102_s30, %s3864_s30   ;;  %s2999_s29 = sphi %s3100_s29, %s3855_s29   ;;  %s2995_s28 = sphi %s3098_s28, %s3863_s28   ;;  %s2991_s27 = sphi %s3096_s27, %s3862_s27  }
  0x15   : > { %3809 = sst [smem:[#allocation18_spill]] %s2999_s29  ;;  %s2201_s17 = sadd.s32 4294967294, %s3031_s15  }
  0x16   : > { %3810 = sst [smem:[#allocation19_spill]] %s3011_s10  ;;  %s39_s18 = sadd.s32 1, %s3023_s13 }
  0x17   : > { %3811 = sst [smem:[#allocation20_spill]] %s3015_s11  ;;  %s42_s19 = sadd.s32 1, %s3027_s14 }
  0x18   : > { %3812 = sst [smem:[#allocation21_spill]] %s3023_s13  ;;  %p40_p0 = scmp.ge.s32.totalorder %s39_s18, 2 }
  0x19   : > { %3813 = sst [smem:[#allocation22_spill]] %s3027_s14  ;;  %s101_s20 = sadd.s32 1, %s3011_s10 }
  0x1a   : > { %3814 = sst [smem:[#allocation23_spill]] %s3031_s15  ;;  %p108_p1 = scmp.ne.s32.totalorder %s3011_s10, %s3007_s9 }
  0x1b   : > { %p109_p2 = scmp.eq.s32.totalorder %s3031_s15, 0  ;;  %s3867_s18 = smov (%p40_p0, %s39_s18), 0 }
  0x1c   : > { %3815 = sst [smem:[#allocation24_spill]] %s3867_s18  ;;  %s3869_s19 = smov (!%p40_p0, %s42_s19), %s3027_s14 }
  0x1d   : > { %s98_s21 = ssub.s32 %s3023_s13, %s3867_s18  ;;  %p3164_p3 = por %p109_p2, %p108_p1 }
  0x1e   : > { %p44_p4 = scmp.ge.s32.totalorder %s3869_s19, 2  ;;  %p99_p5 = scmp.eq.s32.totalorder %s98_s21, 0 }
  0x1f   : > { %p114_p6 = scmp.ne.s32.totalorder %s3007_s9, %s3003_s30  ;;  %p115_p7 = scmp.eq.s32.totalorder %s3150_s16, 0 }
  0x20   : > { %s3871_s19 = smov (%p44_p4, %s3869_s19), 0  ;;  %s257_s26 = sadd.s32 1, %s2999_s29 }
  0x21   : > { %3817 = sst [smem:[#allocation25_spill]] %s3871_s19  ;;  %p3175_p8 = por %p115_p7, %p114_p6 }
  0x22   : > { %s3173_s23 = scalar_select %p99_p5, %s3011_s10, %s101_s20  }
  0x23   : > { %s3819_s24 = scalar_select %p3175_p8, 1, 0 }
  0x24   : > { %3818 = sst [smem:[#allocation26_spill]] %s3173_s23  ;;  %s254_s25 = ssub.s32 %s3027_s14, %s3871_s19 }
  0x25   : > { %p255_p9 = scmp.eq.s32.totalorder %s254_s25, 0  ;;  %p267_p10 = scmp.ne.s32.totalorder %s2999_s29, %s2995_s28 }
  0x26   : > { %p268_p11 = scmp.eq.s32.totalorder %s3150_s16, 3  ;;  %p273_p13 = scmp.ne.s32.totalorder %s2995_s28, %s2991_s27 }
  0x27   : > { %s3186_s30 = scalar_select %p255_p9, %s2999_s29, %s257_s26  }
  0x28   : > { %p3188_p12 = por %p268_p11, %p267_p10  ;;  %p274_p0 = scmp.eq.s32.totalorder %s2201_s17, 3 }
  0x29   : > { %3820 = sst [smem:[#allocation27_spill]] %s3186_s30  ;;  %p2529_p1 = scmp.lt.s32.totalorder %s3031_s15, 4 }
  0x2a   : > { %s3821_s21 = scalar_select %p3188_p12, 1, 0 }
  0x2b   : > { %s3196_s20 = sand.u32 1, %s3011_s10   ;;  %p3198_p2 = por %p274_p0, %p273_p13 }
  0x2c   : > { %3822 = sst [smem:[#allocation28_spill]] %s3821_s21  ;;  %p3205_p4 = pnand %p2529_p1, %p3164_p3 }
  0x2d   : > { %s3823_s19 = scalar_select %p3198_p2, 1, 0 }
  0x2e   : > { %s3784_s18 = sshll.u32 %s3196_s20, 6  ;;  %s3785_s14 = sshll.u32 %s3023_s13, 10 }
  0x2f   : > { %3824 = sst [smem:[#allocation29_spill]] %s3823_s19  ;;  %s335_s25 = scalar_lea.vmem [#allocation6], %s3784_s18 }
  0x30   : > { %s3826_s3 = sld [smem:[#allocation32_spill]]  ;;  %s342_s22 = sshll.u32 %s335_s25, 4  ;;  %s3220_s22 = int_to_ptr.vmem [resolvable:$true] %s342_s22 }
  0x31   : > { %s3827_s30 = sand.u32 1, %s3031_s15   ;;  %p3230_p5 = pneg %p3205_p4 }
  0x32   : > { %s3224_s29 = scalar_lea.sflag [#allocation7], %s3827_s30 }
  0x36   : > { %s3216_s10 = scalar_lea.hbm %s3826_s3, %s3785_s14  ;;  %s2756_s25 = scalar_lea.hbm %s3826_s3, 2048 }
  0x37   : > { %s2751_s19 = scalar_lea.hbm %s3216_s10, 1024  ;;  %p2757_p9 = scmp.lt.u32.totalorder %s3216_s10, %s3826_s3 }
  0x38   : > { %p2752_p3 = scmp.ne.s32.totalorder %s3216_s10, %s2751_s19  ;;  %p2758_p10 = scmp.lt.u32.totalorder %s2756_s25, %s2751_s19 }
  0x39   : > { %p2760_p13 = scmp.lt.u32.totalorder %s2751_s19, %s3216_s10 }
  0x3a   : > { %p2754_p6 = pnand %p3230_p5, %p2752_p3  ;;  %p2759_p11 = por %p2758_p10, %p2757_p9 }
  0x3c   : > { %p2755_p7 = pneg %p2754_p6  ;;  %p2761_p0 = por %p2760_p13, %p2759_p11 }
  0x3e   : > { %p2762_p1 = pnand %p2761_p0, %p2755_p7 }
  0x40   : > { %2765 = shalt.err (!%p2762_p1)
}
  0x41   : > { %s2766_s30 = scalar_lea.vmem %s3220_s22, 1024  ;;  %s3033_s23 = smov [#allocation6]  }
  0x42   : > { %p2767_p3 = scmp.ne.s32.totalorder %s3220_s22, %s2766_s30  ;;  %s2771_s17 = sshll.u32 %s3033_s23, 4  ;;  %s2772_s17 = int_to_ptr.vmem [resolvable:$false] %s2771_s17 }
  0x43   : > { %s2773_s14 = scalar_lea.vmem %s2772_s17, 2048  ;;  %p2774_p12 = scmp.lt.s32.totalorder %s3220_s22, %s2772_s17 }
  0x44   : > { %p2769_p6 = pnand %p2767_p3, %p3230_p5  ;;  %p2775_p8 = scmp.lt.s32.totalorder %s2773_s14, %s2766_s30 }
  0x46   : > { %p2770_p2 = pneg %p2769_p6  ;;  %p2776_p9 = por %p2775_p8, %p2774_p12 }
  0x48   : > { %p2777_p10 = pnand %p2776_p9, %p2770_p2 }
  0x4a   : > { %2780 = shalt.err (!%p2777_p10)
}
  0x4b   : > { %s3791_s18 = smov 64   ;;  %s3793_s19 = smov 4  }
  0x4c   : > { %2515 = dma.hbm_to_vmem [thread:$0]  (!%p3205_p4), %s3216_s10, 1024, %s3220_s22, %s3224_s29, %s3791_s18, %s3791_s18, %s3793_s19  }
  0x4d   : > { %s3829_s25 = sshll.u32 %s3023_s13, 10  ;;  %s3830_s14 = sshll.u32 %s3196_s20, 6 }
  0x4e   : > { %s3262_s17 = scalar_lea.hbm %s3772_s4, %s3829_s25  ;;  %s356_s3 = scalar_lea.vmem [#allocation8], %s3830_s14 }
  0x4f   : > { %s363_s8 = sshll.u32 %s356_s3, 4  ;;  %p2219_p8 = scmp.ge.s32.totalorder %s3031_s15, 1  ;;  %s3266_s8 = int_to_ptr.vmem [resolvable:$true] %s363_s8 }
  0x50   : > { %p421_p12 = scmp.lt.s32.totalorder %s3031_s15, 5  ;;  %s3271_s21 = sshll.u32 %s3196_s20, 7 }
  0x51   : > { %s3274_s7 = sshll.u32 %s3023_s13, 11  ;;  %s3832_s5 = sld [smem:[#allocation33_spill]] }
  0x52   : > { %p3276_p2 = pnand %p2219_p8, %p421_p12  ;;  %s377_s3 = scalar_lea.vmem [#allocation9], %s3271_s21 }
  0x53   : > { %s384_s23 = sshll.u32 %s377_s3, 4  ;;  %s3833_s14 = sand.u32 1, %s3031_s15   ;;  %s3287_s23 = int_to_ptr.vmem [resolvable:$true] %s384_s23 }
  0x54   : > { %s3831_s10 = scalar_select %p3276_p2, 1, 0 }
  0x55   : > { %s3291_s18 = scalar_lea.sflag [#allocation10], %s3833_s14 }
  0x57   : > { %s3284_s30 = scalar_lea.hbm %s3832_s5, %s3274_s7  ;;  %s2786_s25 = scalar_lea.hbm %s3832_s5, 4096 }
  0x58   : > { %s2781_s19 = scalar_lea.hbm %s3284_s30, 2048  ;;  %p2787_p0 = scmp.lt.u32.totalorder %s3284_s30, %s3832_s5 }
  0x59   : > { %p2782_p7 = scmp.ne.s32.totalorder %s3284_s30, %s2781_s19  ;;  %p2788_p1 = scmp.lt.u32.totalorder %s2786_s25, %s2781_s19 }
  0x5a   : > { %p2790_p6 = scmp.lt.u32.totalorder %s2781_s19, %s3284_s30 }
  0x5b   : > { %p2784_p11 = pnand %p2782_p7, %p3230_p5  ;;  %p2789_p3 = por %p2788_p1, %p2787_p0 }
  0x5d   : > { %p2785_p13 = pneg %p2784_p11  ;;  %p2791_p9 = por %p2790_p6, %p2789_p3 }
  0x5f   : > { %p2792_p10 = pnand %p2791_p9, %p2785_p13 }
  0x61   : > { %2795 = shalt.err (!%p2792_p10)
}
  0x62   : > { %s2796_s3 = scalar_lea.vmem %s3287_s23, 2048  ;;  %s3036_s13 = smov [#allocation9]  }
  0x63   : > { %p2797_p8 = scmp.ne.s32.totalorder %s3287_s23, %s2796_s3  ;;  %s2801_s14 = sshll.u32 %s3036_s13, 4  ;;  %s2802_s14 = int_to_ptr.vmem [resolvable:$false] %s2801_s14 }
  0x64   : > { %s2803_s0 = scalar_lea.vmem %s2802_s14, 4096  ;;  %p2804_p11 = scmp.lt.s32.totalorder %s3287_s23, %s2802_s14 }
  0x65   : > { %p2799_p12 = pnand %p2797_p8, %p3230_p5  ;;  %p2805_p2 = scmp.lt.s32.totalorder %s2803_s0, %s2796_s3 }
  0x67   : > { %p2800_p7 = pneg %p2799_p12  ;;  %p2806_p0 = por %p2805_p2, %p2804_p11 }
  0x69   : > { %p2807_p1 = pnand %p2806_p0, %p2800_p7 }
  0x6b   : > { %2810 = shalt.err (!%p2807_p1)
}
  0x6c   : > { %s3799_s1 = smov 128   ;;  %s3800_s19 = smov 8  }
  0x6d   : > { %2521 = dma.hbm_to_vmem [thread:$0]  (!%p3205_p4), %s3284_s30, 2048, %s3287_s23, %s3291_s18, %s3799_s1, %s3799_s1, %s3800_s19  }
  0x6e   : > { %s3322_s3 = scalar_lea.hbm %s3770_s2, %s3274_s7  ;;  %s314_s13 = scalar_lea.vmem [#allocation3], %s3271_s21 }
  0x6f   : > { %s321_s14 = sshll.u32 %s314_s13, 4  ;;  %s3331_s15 = scalar_lea.hbm %s3774_s6, %s3274_s7  ;;  %s3325_s14 = int_to_ptr.vmem [resolvable:$true] %s321_s14 }
  0x70   : > { %s311_s11 = scalar_lea.sflag [#allocation4], %s3196_s20  ;;  %s2811_s30 = scalar_lea.hbm %s3322_s3, 2048 }
  0x71   : > { %p2812_p2 = scmp.ne.s32.totalorder %s3322_s3, %s2811_s30  ;;  %s2816_s25 = scalar_lea.hbm %s3770_s2, 4096 }
  0x72   : > { %p2817_p6 = scmp.lt.u32.totalorder %s3322_s3, %s3770_s2  ;;  %p2818_p9 = scmp.lt.u32.totalorder %s2816_s25, %s2811_s30 }
  0x73   : > { %p2814_p13 = pnand %p2812_p2, %p3230_p5  ;;  %p2820_p8 = scmp.lt.u32.totalorder %s2811_s30, %s3322_s3 }
  0x74   : > { %p2819_p10 = por %p2818_p9, %p2817_p6 }
  0x75   : > { %p2815_p3 = pneg %p2814_p13 }
  0x76   : > { %p2821_p12 = por %p2820_p8, %p2819_p10 }
  0x78   : > { %p2822_p7 = pnand %p2821_p12, %p2815_p3 }
  0x7a   : > { %2825 = shalt.err (!%p2822_p7)
}
  0x7b   : > { %s2826_s5 = scalar_lea.vmem %s3325_s14, 2048  ;;  %s3039_s7 = smov [#allocation3]  }
  0x7c   : > { %p2827_p11 = scmp.ne.s32.totalorder %s3325_s14, %s2826_s5  ;;  %s2831_s13 = sshll.u32 %s3039_s7, 4  ;;  %s2832_s13 = int_to_ptr.vmem [resolvable:$false] %s2831_s13 }
  0x7d   : > { %s2833_s1 = scalar_lea.vmem %s2832_s13, 4096  ;;  %p2834_p2 = scmp.lt.s32.totalorder %s3325_s14, %s2832_s13 }
  0x7e   : > { %p2829_p0 = pnand %p2827_p11, %p3230_p5  ;;  %p2835_p13 = scmp.lt.s32.totalorder %s2833_s1, %s2826_s5 }
  0x80   : > { %p2830_p1 = pneg %p2829_p0  ;;  %p2836_p6 = por %p2835_p13, %p2834_p2 }
  0x82   : > { %p2837_p9 = pnand %p2836_p6, %p2830_p1 }
  0x84   : > { %2840 = shalt.err (!%p2837_p9)
}
  0x85   : > { %s3834_s19 = smov 8   ;;  %s3835_s0 = smov 128  }
  0x86   : > { %2512 = dma.hbm_to_vmem [thread:$0]  (!%p3205_p4), %s3322_s3, 2048, %s3325_s14, %s311_s11, %s3835_s0, %s3835_s0, %s3834_s19  }
  0x87   : > { %s2841_s30 = scalar_lea.hbm %s3262_s17, 1024  ;;  %s2846_s25 = scalar_lea.hbm %s3772_s4, 2048 }
  0x88   : > { %p2842_p3 = scmp.ne.s32.totalorder %s3262_s17, %s2841_s30  ;;  %p2847_p12 = scmp.lt.u32.totalorder %s3262_s17, %s3772_s4 }
  0x89   : > { %p2848_p7 = scmp.lt.u32.totalorder %s2846_s25, %s2841_s30  ;;  %p2850_p0 = scmp.lt.u32.totalorder %s2841_s30, %s3262_s17 }
  0x8a   : > { %p2844_p10 = pnand %p2842_p3, %p3230_p5 }
  0x8b   : > { %p2849_p11 = por %p2848_p7, %p2847_p12 }
  0x8c   : > { %p2845_p8 = pneg %p2844_p10 }
  0x8d   : > { %p2851_p1 = por %p2850_p0, %p2849_p11 }
  0x8f   : > { %p2852_p2 = pnand %p2851_p1, %p2845_p8 }
  0x91   : > { %2855 = shalt.err (!%p2852_p2)
}
  0x92   : > { %s2856_s11 = scalar_lea.vmem %s3266_s8, 1024  ;;  %s3040_s20 = smov [#allocation8]  }
  0x93   : > { %p2857_p13 = scmp.ne.s32.totalorder %s3266_s8, %s2856_s11  ;;  %s2861_s3 = sshll.u32 %s3040_s20, 4  ;;  %s2862_s3 = int_to_ptr.vmem [resolvable:$false] %s2861_s3 }
  0x94   : > { %s2863_s14 = scalar_lea.vmem %s2862_s3, 2048  ;;  %p2864_p3 = scmp.lt.s32.totalorder %s3266_s8, %s2862_s3 }
  0x95   : > { %p2859_p6 = pnand %p2857_p13, %p3230_p5  ;;  %p2865_p10 = scmp.lt.s32.totalorder %s2863_s14, %s2856_s11 }
  0x97   : > { %p2860_p9 = pneg %p2859_p6  ;;  %p2866_p12 = por %p2865_p10, %p2864_p3 }
  0x99   : > { %p2867_p7 = pnand %p2866_p12, %p2860_p9 }
  0x9b   : > { %2870 = shalt.err (!%p2867_p7)
}
  0x9c   : > { %s3836_s13 = smov 4   ;;  %s3837_s1 = smov 64  }
  0x9d   : > { %2518 = dma.hbm_to_vmem [thread:$0]  (!%p3205_p4), %s3262_s17, 1024, %s3266_s8, %s3224_s29, %s3837_s1, %s3837_s1, %s3836_s13  }
  0x9e   : > { %s398_s19 = scalar_lea.vmem [#allocation11], %s3271_s21  ;;  %s2871_s30 = scalar_lea.hbm %s3331_s15, 2048 }
  0x9f   : > { %s405_s0 = sshll.u32 %s398_s19, 4  ;;  %p2872_p8 = scmp.ne.s32.totalorder %s3331_s15, %s2871_s30  ;;  %s3386_s0 = int_to_ptr.vmem [resolvable:$true] %s405_s0 }
  0xa0   : > { %s2876_s25 = scalar_lea.hbm %s3774_s6, 4096  ;;  %p2877_p1 = scmp.lt.u32.totalorder %s3331_s15, %s3774_s6 }
  0xa1   : > { %p2874_p11 = pnand %p2872_p8, %p3230_p5  ;;  %p2878_p2 = scmp.lt.u32.totalorder %s2876_s25, %s2871_s30 }
  0xa2   : > { %p2880_p6 = scmp.lt.u32.totalorder %s2871_s30, %s3331_s15 }
  0xa3   : > { %p2875_p0 = pneg %p2874_p11  ;;  %p2879_p13 = por %p2878_p2, %p2877_p1 }
  0xa5   : > { %p2881_p9 = por %p2880_p6, %p2879_p13 }
  0xa7   : > { %p2882_p3 = pnand %p2881_p9, %p2875_p0 }
  0xa9   : > { %2885 = shalt.err (!%p2882_p3)
}
  0xaa   : > { %s2886_s8 = scalar_lea.vmem %s3386_s0, 2048  ;;  %s3041_s29 = smov [#allocation11]  }
  0xab   : > { %p2887_p10 = scmp.ne.s32.totalorder %s3386_s0, %s2886_s8  ;;  %s2891_s21 = sshll.u32 %s3041_s29, 4  ;;  %s2892_s21 = int_to_ptr.vmem [resolvable:$false] %s2891_s21 }
  0xac   : > { %s2893_s17 = scalar_lea.vmem %s2892_s21, 4096  ;;  %p2894_p8 = scmp.lt.s32.totalorder %s3386_s0, %s2892_s21 }
  0xad   : > { %p2889_p12 = pnand %p2887_p10, %p3230_p5  ;;  %p2895_p11 = scmp.lt.s32.totalorder %s2893_s17, %s2886_s8 }
  0xaf   : > { %p2890_p7 = pneg %p2889_p12  ;;  %p2896_p1 = por %p2895_p11, %p2894_p8 }
  0xb1   : > { %p2897_p2 = pnand %p2896_p1, %p2890_p7 }
  0xb3   : > { %2900 = shalt.err (!%p2897_p2)
}
  0xb4   : > { %2524 = dma.hbm_to_vmem [thread:$0]  (!%p3205_p4), %s3331_s15, 2048, %s3386_s0, %s3291_s18, %s3837_s1, %s3837_s1, %s3836_s13  }
  0xb5   : > { %p3838_p5 = scmp.ne.s32.totalorder %s3831_s10, 0 }
  0xb6   : > { %s427_s27 = sand.u32 (!%p3838_p5), 1, %s3007_s9   ;;  %p3839_p0 = scmp.ne.s32.totalorder (!%p3838_p5), %s3819_s24, 0 }
  0xb7   : > { %425 = sbr.rel (%p3838_p5) target bundleno = 3968 (0xf80), region = 52  ;;  %s2220_s11 = sshll.u32 (!%p3838_p5), %s427_s27, 7 }
  0xb8   : > { %s428_s20 = scalar_lea.sflag (!%p3838_p5), [#allocation4], %s427_s27  ;;  %s3416_s3 = scalar_lea.vmem (!%p3838_p5), [#allocation3], %s2220_s11 }
  0xbe   : > { %2974 = dma.done.wait (%p3839_p0), %s428_s20, 2048  }
  0xbf   : > { %2976 = vsyncadd (%p3839_p0), %s428_s20, 4294965248  ;;  %s436_s26 = sand.u32 1, %s3150_s16   ;;  %s2221_s14 = sshll.u32 %s427_s27, 6 }
  0xc0   : > { %s437_s15 = scalar_lea.sflag [#allocation7], %s436_s26  ;;  %s3423_s18 = scalar_lea.vmem [#allocation6], %s2221_s14 }
  0xc1   : > { %2978 = dma.done.wait (%p3839_p0), %s437_s15, 2048  }
  0xc2   : > { %2980 = vsyncadd (%p3839_p0), %s437_s15, 4294965248  ;;  %s3429_s10 = scalar_lea.vmem [#allocation8], %s2221_s14  ;;  %s455_s13 = scalar_lea.sflag [#allocation10], %s436_s26 }
  0xc3   : > { %s3431_s1 = scalar_lea.vmem [#allocation9], %s2220_s11 }
  0xc4   : > { %2982 = dma.done.wait (%p3839_p0), %s455_s13, 4096  }
  0xc5   : > { %2984 = vsyncadd (%p3839_p0), %s455_s13, 4294963200  ;;  %s3840_s16 = sld [smem:[#allocation20_spill]]  ;;  %s3801_s19 = sand.u32 1, %s2995_s28  }
  0xc6   : > { %s2225_s0 = sshll.u32 %s3801_s19, 4  ;;  %p535_p4 = scmp.lt.s32.totalorder %s3019_s12, 1 }
  0xc7   : > { %s3841_s7 = sld [smem:[#allocation30_spill]]  ;;  %s3842_s21 = sld [smem:[#allocation31_spill]] }
  0xc8   : > { %s536_s30 = scalar_select %p535_p4, %s3019_s12, 1 }
  0xc9   : > { %s3843_s14 = sld [smem:[#allocation34_spill]]  ;;  %s3457_s13 = scalar_lea.vmem [#allocation11], %s2220_s11 }
  0xca   : > { %s2334_s22 = sshll.u32 %s536_s30, 4  ;;  %s3459_s19 = scalar_lea.vmem [#allocation12], %s2225_s0 }
  0xcb   : > { %p545_p13 = scmp.lt.s32.totalorder %s3840_s16, 1  ;;  %p2232_p6 = scmp.ne.s32.totalorder %s3840_s16, 0 }
  0xcd   : > { %s546_s23 = scalar_select %p545_p13, %s3840_s16, 1 }
  0xce   : > { %s539_s8 = scalar_lea.vmem %s3841_s7, %s2334_s22  ;;  %s3450_s17 = scalar_lea.vmem %s3842_s21, %s2334_s22 }
  0xcf   : > { %s2336_s27 = sshll.u32 %s546_s23, 5  ;;  %554 = sbr.rel (%p2232_p6) target bundleno = 214 (0xd6), region = 76  ;;  %v555_v0 = vld [vmem:[%s539_s8] sm:$0xff] (!%p2232_p6)  ;;  %v556_v1 = vld [vmem:[%s539_s8 + $0x8] sm:$0xff] (!%p2232_p6) }
  0xd0   : > { %s3455_s15 = scalar_lea.vmem %s3843_s14, %s2336_s27  ;;  %557 = vst [vmem:[#allocation2] sm:$0xff] (!%p2232_p6), %v555_v0  ;;  %558 = vst [vmem:[#allocation2 + $0x8] sm:$0xff] (!%p2232_p6), %v556_v1 }
  0xd6 PF: > { %v2631_v2 = vld [vmem:[%s3416_s3 + $0x4] ss:$8 sps:$4 sm:$0xff]   ;;  %v2633_v3 = vld [vmem:[%s3416_s3] ss:$8 sps:$4 sm:$0xff]   ;;  %v3042_v4 = vmov 0   ;;  %v561_v19 = vld [vmem:[%s3450_s17] sm:$0xff]  ;;  %v586_v27 = vlaneseq }
  0xd7   : > { %706 = vmatprep.mubr.bf16.mxu0 %v3042_v4  ;;  %674 = vmatprep.subr.bf16.mxu0 %v2631_v2  ;;  %v2634_v5 = vld [vmem:[%s3416_s3 + $0x14] ss:$8 sps:$4 sm:$0xff]   ;;  %v2636_v6 = vld [vmem:[%s3416_s3 + $0x10] ss:$8 sps:$4 sm:$0xff]   ;;  %v2637_v7 = vld [vmem:[%s3416_s3 + $0x24] ss:$8 sps:$4 sm:$0xff]  }
  0xd8   : > { %675 = vmatpush1.bf16.msra.mxu0 %v2633_v3  ;;  %v2639_v8 = vld [vmem:[%s3416_s3 + $0x20] ss:$8 sps:$4 sm:$0xff]   ;;  %v2640_v9 = vld [vmem:[%s3416_s3 + $0x34] ss:$8 sps:$4 sm:$0xff]   ;;  %v2642_v10 = vld [vmem:[%s3416_s3 + $0x30] ss:$8 sps:$4 sm:$0xff]  }
  0xd9   : > { %676 = vmatprep.subr.bf16.mxu0 %v2634_v5  ;;  %v2643_v11 = vld [vmem:[%s3416_s3 + $0x44] ss:$8 sps:$4 sm:$0xff]   ;;  %v2645_v12 = vld [vmem:[%s3416_s3 + $0x40] ss:$8 sps:$4 sm:$0xff]   ;;  %v2646_v13 = vld [vmem:[%s3416_s3 + $0x54] ss:$8 sps:$4 sm:$0xff]  }
  0xda   : > { %v2648_v14 = vld [vmem:[%s3416_s3 + $0x50] ss:$8 sps:$4 sm:$0xff]   ;;  %v2649_v15 = vld [vmem:[%s3416_s3 + $0x64] ss:$8 sps:$4 sm:$0xff]   ;;  %v2651_v16 = vld [vmem:[%s3416_s3 + $0x60] ss:$8 sps:$4 sm:$0xff]  }
  0xdb   : > { %v3477_v17 = vld [vmem:[#allocation2] sm:$0xff]  ;;  %v3479_v18 = vld [vmem:[#allocation2 + $0x8] sm:$0xff]  ;;  %v3043_v26 = vmov 0.0   ;;  %vm3044_vm0 = vmmov 0   ;;  %v3493_v28 = vshrl.u32 %v586_v27, 7  ;;  %vm829_vm1 = vcmask 261120  }
  0xdc   : > { %677 = vmatpush1.bf16.msra.mxu0 %v2636_v6  ;;  %v562_v20 = vld [vmem:[%s3450_s17 + $0x8] sm:$0xff]  ;;  %v566_v23 = vadd.f32 %v561_v19, %v3477_v17  ;;  %2397 = vmatprep.subr.bf16.mxu1 %v3043_v26  ;;  %v3497_v30 = vld [vmem:[%s3455_s15] sm:$0xff]  ;;  %s3045_s11 = smov 96   ;;  %v2655_v45 = vld [vmem:[%s3423_s18] sm:$0xff]   ;;  %v569_v56 = vpack.c.bf16 %v3479_v18, %v3477_v17  ;;  %vm877_vm2 = vcmask 130048  }
  0xdd   : > { %678 = vmatprep.subr.bf16.mxu0 %v2637_v7  ;;  %v2652_v21 = vld [vmem:[%s3416_s3 + $0x74] ss:$8 sps:$4 sm:$0xff]   ;;  %v2654_v22 = vld [vmem:[%s3416_s3 + $0x70] ss:$8 sps:$4 sm:$0xff]   ;;  %v567_v24 = vadd.f32 %v562_v20, %v3479_v18  ;;  %2413 = vmatprep.mubr.msk.bf16.mxu1 %vm3044_vm0, %v3043_v26  ;;  %v588_v29 = vsub.s32 0, %v3493_v28  ;;  %v2656_v46 = vld [vmem:[%s3423_s18 + $0x8] sm:$0xff]  }
  0xde   : > { %v3500_v31 = vld [vmem:[%s3455_s15 + $0x8] sm:$0xff]  ;;  %2398 = vmatpush3.bf16.msra.mxu1 %v2655_v45  ;;  %v2657_v47 = vld [vmem:[%s3423_s18 + $0x10] sm:$0xff]   ;;  %v2659_v49 = vld [vmem:[%s3423_s18 + $0x20] sm:$0xff]   ;;  %s3046_s3 = smov 64  }
  0xdf   : > { %v568_v25 = vpack.c.bf16 %v567_v24, %v566_v23  ;;  %v589_v32 = vrot.slane %v3497_v30, %v588_v29  ;;  %v593_v34 = vrot.slane %v3500_v31, %v588_v29  ;;  %2399 = vmatprep.subr.bf16.mxu1 %v3043_v26  ;;  %v2658_v48 = vld [vmem:[%s3423_s18 + $0x18] sm:$0xff]   ;;  %v2660_v52 = vld [vmem:[%s3423_s18 + $0x28] sm:$0xff]   ;;  %v2661_v53 = vld [vmem:[%s3423_s18 + $0x30] sm:$0xff]  }
  0xe0   : > { %679 = vmatpush1.bf16.msra.mxu0 %v2639_v8  ;;  %v2662_v55 = vld [vmem:[%s3423_s18 + $0x38] sm:$0xff]   ;;  %s3047_s18 = smov 32  }
  0xe1   : > { %680 = vmatprep.subr.bf16.mxu0 %v2640_v9 }
  0xe2   : > { %2400 = vmatpush3.bf16.msra.mxu1 %v2656_v46 }
  0xe3   : > { %2401 = vmatprep.subr.bf16.mxu1 %v3043_v26 }
  0xe4   : > { %681 = vmatpush1.bf16.msra.mxu0 %v2642_v10 }
  0xe5   : > { %682 = vmatprep.subr.bf16.mxu0 %v2643_v11 }
  0xe6   : > { %2402 = vmatpush3.bf16.msra.mxu1 %v2657_v47 }
  0xe7   : > { %2403 = vmatprep.subr.bf16.mxu1 %v3043_v26 }
  0xe8   : > { %683 = vmatpush1.bf16.msra.mxu0 %v2645_v12  ;;  %v735_v12 = vsub.s32 1, %v3493_v28 }
  0xe9   : > { %684 = vmatprep.subr.bf16.mxu0 %v2646_v13 }
  0xea   : > { %2404 = vmatpush3.bf16.msra.mxu1 %v2658_v48 }
  0xeb   : > { %2405 = vmatprep.subr.bf16.mxu1 %v3043_v26 }
  0xec   : > { %685 = vmatpush1.bf16.msra.mxu0 %v2648_v14 }
  0xed   : > { %686 = vmatprep.subr.bf16.mxu0 %v2649_v15  ;;  %v736_v15 = vrot.slane %v3497_v30, %v735_v12 }
  0xee   : > { %2406 = vmatpush3.bf16.msra.mxu1 %v2659_v49 }
  0xef   : > { %2407 = vmatprep.subr.bf16.mxu1 %v3043_v26 }
  0xf0   : > { %687 = vmatpush1.bf16.msra.mxu0 %v2651_v16 }
  0xf1   : > { %688 = vmatprep.subr.bf16.mxu0 %v2652_v21 }
  0xf2   : > { %2408 = vmatpush3.bf16.msra.mxu1 %v2660_v52 }
  0xf3   : > { %2409 = vmatprep.subr.bf16.mxu1 %v3043_v26 }
  0xf4   : > { %689 = vmatpush1.bf16.msra.mxu0 %v2654_v22 }
  0xf5   : > { %2417 = vmatprep.subr.bf16.mxu0 %v3043_v26 }
  0xf6   : > { %2410 = vmatpush3.bf16.msra.mxu1 %v2661_v53 }
  0xf7   : > { %707 = vmatmul.mubr.bf16.vlgmr.msra.gmra.mrb[0].mxu0 %v568_v25  ;;  %2411 = vmatprep.subr.bf16.mxu1 %v3043_v26 }
  0xf8   : > { %2419 = vmatprep.mubr.msk.bf16.mxu0 %vm3044_vm0, %v3043_v26 }
  0xfa   : > { %2412 = vmatpush3.bf16.msra.mxu1 %v2662_v55 }
  0xfb   : > { %2423 = vmatprep.subr.bf16.mxu1 %v3043_v26 }
  0xfd   : > { %2414 = vmatmul.mubr.bf16.vlgmr.msra.gmra.mrb[0].mxu1 %v569_v56 }
  0xfe   : > { %2425 = vmatprep.mubr.msk.bf16.mxu1 %vm3044_vm0, %v3043_v26 }
 0x1ca   : > { %v708_v33 = vpop.f32.mrb[0].mxu0 }
 0x1cb   : > { %v710_v35 = vpop.f32.mrb[1].mxu0  ;;  %v709_v37 = vadd.f32 %v708_v33, %v589_v32 }
 0x1cc   : > { %v712_v36 = vpop.f32.mrb[2].mxu0  ;;  %v711_v40 = vadd.f32 %v710_v35, %v593_v34 }
 0x1cd   : > { %v713_v38 = vadd.f32 %v712_v36, %v589_v32  ;;  %v714_v39 = vpop.f32.mrb[3].mxu0 }
 0x1ce   : > { %v715_v41 = vadd.f32 %v714_v39, %v593_v34 }
 0x1cf   : > { %v3504_v42 = vpack.c.bf16 %v713_v38, %v709_v37 }
 0x1d0   : > { %v3506_v43 = vpack.c.bf16 %v715_v41, %v711_v40  ;;  %v819_v13 = vpop.f32.mrb[0].mxu1 }
 0x1d1   : > { %v2415_v14 = vpop.f32.mrb[1].mxu1  ;;  %v820_v20 = vadd.f32 %v819_v13, %v736_v15 }
 0x1d2   : > { %954 = vrot.lane.b32.xlu0 %v3506_v43, %s3045_s11  ;;  %v834_v44 = vsel %vm829_vm1, %v3506_v43, 0  ;;  %v822_v16 = vpop.f32.mrb[2].mxu1 }
 0x1d3   : > { %2418 = vmatpush3.bf16.xpose.msra.mxu0 %v834_v44  ;;  %v2416_v19 = vpop.f32.mrb[3].mxu1  ;;  %v823_v21 = vadd.f32 %v822_v16, %v736_v15 }
 0x1d4   : > { %2429 = vmatprep.subr.bf16.mxu0 %v3043_v26 }
 0x1d5   : > { %v3552_v22 = vpack.c.bf16 %v823_v21, %v820_v20 }
 0x1d6   : > { %951 = vrot.lane.b32.xlu0 %v3504_v42, %s3045_s11 }
 0x1d7   : > { %2424 = vmatpush3.bf16.msra.mxu1 %v3552_v22 }
 0x1d8   : > { %2435 = vmatprep.subr.bf16.mxu1 %v3043_v26 }
 0x1da   : > { %2420 = vmatmul.mubr.msk.bf16.vlgmr.msra.gmra.mrb[4].mxu0 %vm829_vm1, %v3504_v42 }
 0x1db   : > { %2431 = vmatprep.mubr.msk.bf16.mxu0 %vm3044_vm0, %v3043_v26 }
 0x244   : > { %v955_v50 = vpop.permute.xlu0 %954 }
 0x245   : > { %v960_v51 = vsel %vm829_vm1, %v955_v50, 0  ;;  %v2665_v50 = vld [vmem:[%s3429_s10 + $0x10] sm:$0xff]  }
 0x246   : > { %2430 = vmatpush3.bf16.xpose.msra.mxu0 %v960_v51  ;;  %v2666_v51 = vld [vmem:[%s3429_s10 + $0x18] sm:$0xff]  }
 0x247   : > { %2441 = vmatprep.subr.bf16.mxu0 %v3043_v26 }
 0x248   : > { %v952_v54 = vpop.permute.xlu0 %951 }
 0x24d   : > { %2432 = vmatmul.mubr.msk.bf16.vlgmr.msra.gmra.mrb[8].mxu0 %vm829_vm1, %v952_v54 }
 0x24e   : > { %2445 = vmatprep.mubr.msk.bf16.mxu0 %vm3044_vm0, %v3043_v26  ;;  %2442 = vmatpush3.bf16.msra.mxu0 %v2665_v50 }
 0x24f   : > { %2443 = vmatprep.subr.bf16.mxu0 %v3043_v26 }
 0x252   : > { %2444 = vmatpush3.bf16.msra.mxu0 %v2666_v51 }
 0x253   : > { %2457 = vmatprep.subr.bf16.mxu0 %v3043_v26 }
 0x2ad   : > { %v870_v57 = vpop.f32.mrb[4].mxu0 }
 0x2ae   : > { %v2421_v58 = vpop.f32.mrb[5].mxu0  ;;  %v878_v59 = vsel %vm877_vm2, %v870_v57, -inf }
 0x2af   : > { %879 = vmax.xlane.f32.xlu1 %v878_v59  ;;  %v873_v60 = vpop.f32.mrb[6].mxu0  ;;  %v2663_v59 = vld [vmem:[%s3429_s10] sm:$0xff]  }
 0x2b0   : > { %v2422_v61 = vpop.f32.mrb[7].mxu0  ;;  %v881_v62 = vsel %vm877_vm2, %v873_v60, -inf }
 0x2b1   : > { %v2664_v61 = vld [vmem:[%s3429_s10 + $0x8] sm:$0xff]  }
 0x2b3   : > { %882 = vmax.xlane.f32.xlu1 %v881_v62 }
 0x320   : > { %v996_v63 = vpop.f32.mrb[8].mxu0 }
 0x321   : > { %v2433_v0 = vpop.f32.mrb[9].mxu0  ;;  %v1003_v1 = vsel %vm877_vm2, %v996_v63, -inf }
 0x322   : > { %1004 = vmax.xlane.f32.xlu0 %v1003_v1  ;;  %v999_v2 = vpop.f32.mrb[10].mxu0 }
 0x323   : > { %v2434_v3 = vpop.f32.mrb[11].mxu0  ;;  %v1006_v5 = vsel %vm877_vm2, %v999_v2, -inf }
 0x324   : > { %1007 = vmax.xlane.f32.xlu1 %v1006_v5 }
 0x338   : > { %1194 = vrot.lane.b32.xlu0 %v3506_v43, %s3046_s3 }
 0x33c   : > { %v880_v6 = vpop.xlane.xlu1 %879 }
 0x33d   : > { %v884_v7 = vsub.f32 %v870_v57, %v880_v6 }
 0x33f   : > { %v886_v8 = vmul.f32 1.442695, %v884_v7 }
 0x340   : > { %v883_v9 = vpop.xlane.xlu1 %882 }
 0x341   : > { %2711 = vpow2.f32 %v886_v8  ;;  %v885_v10 = vsub.f32 %v873_v60, %v883_v9 }
 0x343   : > { %v888_v11 = vmul.f32 1.442695, %v885_v10 }
 0x345   : > { %2713 = vpow2.f32 %v888_v11 }
 0x34b   : > { %v2712_v23 = vpop.eup %2711 }
 0x34c   : > { %v890_v24 = vsel %vm877_vm2, %v2712_v23, 0.0 }
 0x34d   : > { %891 = vadd.xlane.f32.xlu1 %v890_v24 }
 0x34f   : > { %v2714_v25 = vpop.eup %2713 }
 0x350   : > { %v893_v27 = vsel %vm877_vm2, %v2714_v25, 0.0 }
 0x351   : > { %894 = vadd.xlane.f32.xlu1 %v893_v27 }
 0x3af   : > { %v1005_v29 = vpop.xlane.xlu0 %1004 }
 0x3b0   : > { %v1009_v32 = vsub.f32 %v996_v63, %v1005_v29 }
 0x3b1   : > { %v1008_v33 = vpop.xlane.xlu1 %1007 }
 0x3b2   : > { %v1011_v34 = vmul.f32 1.442695, %v1009_v32  ;;  %v1010_v35 = vsub.f32 %v999_v2, %v1008_v33 }
 0x3b3   : > { %v1195_v6 = vpop.permute.xlu0 %1194 }
 0x3b4   : > { %2715 = vpow2.f32 %v1011_v34  ;;  %v1013_v36 = vmul.f32 1.442695, %v1010_v35  ;;  %v1200_v10 = vsel %vm829_vm1, %v1195_v6, 0 }
 0x3b6   : > { %2717 = vpow2.f32 %v1013_v36 }
 0x3be   : > { %v2716_v37 = vpop.eup %2715 }
 0x3bf   : > { %v1015_v38 = vsel %vm877_vm2, %v2716_v37, 0.0 }
 0x3c0   : > { %v2718_v39 = vpop.eup %2717  ;;  %1016 = vadd.xlane.f32.xlu1 %v1015_v38 }
 0x3c1   : > { %v1018_v40 = vsel %vm877_vm2, %v2718_v39, 0.0 }
 0x3c4   : > { %1019 = vadd.xlane.f32.xlu1 %v1018_v40 }
 0x3d5   : > { %1027 = vrot.lane.b32.xlu1 %v3552_v22, %s3045_s11 }
 0x3d9   : > { %1192 = vrot.lane.b32.xlu1 %v3504_v42, %s3046_s3 }
 0x3da   : > { %v892_v41 = vpop.xlane.xlu1 %891 }
 0x3db   : > { %2719 = vrcp.f32 %v892_v41 }
 0x3de   : > { %v895_v44 = vpop.xlane.xlu1 %894 }
 0x3df   : > { %2721 = vrcp.f32 %v895_v44 }
 0x3e5   : > { %v2720_v45 = vpop.eup %2719 }
 0x3e6   : > { %v898_v47 = vmul.f32 %v2720_v45, %v2712_v23 }
 0x3e9   : > { %v2722_v46 = vpop.eup %2721 }
 0x3ea   : > { %v899_v48 = vmul.f32 %v2722_v46, %v2714_v25 }
 0x3ec   : > { %v900_v49 = vpack.c.bf16 %v899_v48, %v898_v47  ;;  %v2667_v48 = vld [vmem:[%s3429_s10 + $0x20] sm:$0xff]  }
 0x3ee   : > { %2426 = vmatmul.mubr.msk.bf16.vlgmr.msra.gmra.mrb[4].mxu1 %vm877_vm2, %v900_v49 }
 0x3ef   : > { %2437 = vmatprep.mubr.msk.bf16.mxu1 %vm3044_vm0, %v3043_v26 }
 0x44d   : > { %v1017_v52 = vpop.xlane.xlu1 %1016 }
 0x44e   : > { %2723 = vrcp.f32 %v1017_v52 }
 0x451   : > { %v1020_v53 = vpop.xlane.xlu1 %1019 }
 0x452   : > { %2725 = vrcp.f32 %v1020_v53 }
 0x455   : > { %v1028_v54 = vpop.permute.xlu1 %1027 }
 0x456   : > { %2436 = vmatpush3.bf16.msra.mxu1 %v1028_v54 }
 0x457   : > { %2449 = vmatprep.subr.bf16.mxu1 %v3043_v26 }
 0x458   : > { %v2724_v55 = vpop.eup %2723 }
 0x459   : > { %v1023_v57 = vmul.f32 %v2724_v55, %v2716_v37  ;;  %v1193_v11 = vpop.permute.xlu1 %1192 }
 0x45c   : > { %v2726_v56 = vpop.eup %2725 }
 0x45d   : > { %v1024_v58 = vmul.f32 %v2726_v56, %v2718_v39 }
 0x45f   : > { %v1025_v60 = vpack.c.bf16 %v1024_v58, %v1023_v57  ;;  %v2668_v57 = vld [vmem:[%s3429_s10 + $0x28] sm:$0xff]  }
 0x461   : > { %2438 = vmatmul.mubr.msk.bf16.vlgmr.msra.gmra.mrb[8].mxu1 %vm877_vm2, %v1025_v60 }
 0x462   : > { %2450 = vmatpush3.bf16.msra.mxu1 %v2663_v59  ;;  %2453 = vmatprep.mubr.msk.bf16.mxu1 %vm3044_vm0, %v3043_v26 }
 0x463   : > { %2451 = vmatprep.subr.bf16.mxu1 %v3043_v26 }
 0x466   : > { %2452 = vmatpush3.bf16.msra.mxu1 %v2664_v61 }
 0x467   : > { %2463 = vmatprep.subr.bf16.mxu1 %v3043_v26 }
 0x4c1   : > { %v938_v62 = vpop.f32.mrb[4].mxu1 }
 0x4c2   : > { %v2427_v63 = vpop.f32.mrb[5].mxu1 }
 0x4c3   : > { %v941_v0 = vpop.f32.mrb[6].mxu1 }
 0x4c4   : > { %v945_v1 = vpack.c.bf16 %v941_v0, %v938_v62  ;;  %v2428_v2 = vpop.f32.mrb[7].mxu1 }
 0x4c6   : > { %2454 = vmatmul.mubr.msk.bf16.vlgmr.msra.gmra.mrb[12].mxu1 %vm829_vm1, %v945_v1 }
 0x4c7   : > { %2465 = vmatprep.mubr.msk.bf16.mxu1 %vm3044_vm0, %v3043_v26 }
 0x534   : > { %v1067_v3 = vpop.f32.mrb[8].mxu1 }
 0x535   : > { %v2439_v5 = vpop.f32.mrb[9].mxu1 }
 0x536   : > { %v1070_v7 = vpop.f32.mrb[10].mxu1 }
 0x537   : > { %v1074_v8 = vpack.c.bf16 %v1070_v7, %v1067_v3  ;;  %v2440_v9 = vpop.f32.mrb[11].mxu1 }
 0x539   : > { %2446 = vmatmul.mubr.msk.bf16.vlgmr.msra.gmra.mrb[12].mxu0 %vm829_vm1, %v1074_v8 }
 0x53a   : > { %2458 = vmatpush3.bf16.xpose.msra.mxu0 %v1200_v10  ;;  %2459 = vmatprep.mubr.msk.bf16.mxu0 %vm3044_vm0, %v3043_v26 }
 0x53b   : > { %2469 = vmatprep.subr.bf16.mxu0 %v3043_v26 }
 0x541   : > { %2460 = vmatmul.mubr.msk.bf16.vlgmr.msra.gmra.mrb[16].mxu0 %vm829_vm1, %v1193_v11 }
 0x542   : > { %2473 = vmatprep.mubr.msk.bf16.mxu0 %vm3044_vm0, %v3043_v26  ;;  %2470 = vmatpush3.bf16.msra.mxu0 %v2667_v48 }
 0x543   : > { %2471 = vmatprep.subr.bf16.mxu0 %v3043_v26 }
 0x546   : > { %2472 = vmatpush3.bf16.msra.mxu0 %v2668_v57 }
 0x547   : > { %2483 = vmatprep.subr.bf16.mxu0 %v3043_v26 }
 0x599   : > { %v1185_v12 = vpop.f32.mrb[12].mxu1 }
 0x59a   : > { %v2455_v13 = vpop.f32.mrb[13].mxu1 }
 0x59b   : > { %v1188_v14 = vpop.f32.mrb[14].mxu1 }
 0x59c   : > { %v2456_v15 = vpop.f32.mrb[15].mxu1 }
 0x60c   : > { %v1129_v16 = vpop.f32.mrb[12].mxu0 }
 0x60d   : > { %v3590_v19 = vadd.f32 %v1185_v12, %v1129_v16  ;;  %v2447_v20 = vpop.f32.mrb[13].mxu0 }
 0x60e   : > { %v1132_v21 = vpop.f32.mrb[14].mxu0 }
 0x60f   : > { %v3592_v23 = vadd.f32 %v1188_v14, %v1132_v21  ;;  %v2448_v24 = vpop.f32.mrb[15].mxu0 }
 0x614   : > { %v1236_v25 = vpop.f32.mrb[16].mxu0 }
 0x615   : > { %v2461_v27 = vpop.f32.mrb[17].mxu0  ;;  %v1243_v29 = vsel %vm877_vm2, %v1236_v25, -inf }
 0x616   : > { %1244 = vmax.xlane.f32.xlu1 %v1243_v29  ;;  %v1239_v32 = vpop.f32.mrb[18].mxu0 }
 0x617   : > { %v2462_v33 = vpop.f32.mrb[19].mxu0  ;;  %v1246_v34 = vsel %vm877_vm2, %v1239_v32, -inf }
 0x618   : > { %1247 = vmax.xlane.f32.xlu0 %v1246_v34 }
 0x62e   : > { %1266 = vrot.lane.b32.xlu0 %v3552_v22, %s3046_s3 }
 0x6a3   : > { %v1245_v35 = vpop.xlane.xlu1 %1244 }
 0x6a4   : > { %v1249_v36 = vsub.f32 %v1236_v25, %v1245_v35 }
 0x6a5   : > { %v1248_v37 = vpop.xlane.xlu0 %1247 }
 0x6a6   : > { %v1251_v38 = vmul.f32 1.442695, %v1249_v36  ;;  %v1250_v39 = vsub.f32 %v1239_v32, %v1248_v37 }
 0x6a8   : > { %2727 = vpow2.f32 %v1251_v38  ;;  %v1253_v40 = vmul.f32 1.442695, %v1250_v39 }
 0x6a9   : > { %v1267_v41 = vpop.permute.xlu0 %1266 }
 0x6aa   : > { %2729 = vpow2.f32 %v1253_v40  ;;  %2464 = vmatpush3.bf16.msra.mxu1 %v1267_v41 }
 0x6ab   : > { %2477 = vmatprep.subr.bf16.mxu1 %v3043_v26 }
 0x6b2   : > { %v2728_v44 = vpop.eup %2727 }
 0x6b3   : > { %v1255_v45 = vsel %vm877_vm2, %v2728_v44, 0.0 }
 0x6b4   : > { %v2730_v46 = vpop.eup %2729  ;;  %1256 = vadd.xlane.f32.xlu1 %v1255_v45 }
 0x6b5   : > { %v1258_v47 = vsel %vm877_vm2, %v2730_v46, 0.0 }
 0x6b8   : > { %1259 = vadd.xlane.f32.xlu1 %v1258_v47 }
 0x6c9   : > { %1379 = vrot.lane.b32.xlu1 %v3506_v43, %s3047_s18 }
 0x6cd   : > { %1377 = vrot.lane.b32.xlu1 %v3504_v42, %s3047_s18 }
 0x741   : > { %v1257_v49 = vpop.xlane.xlu1 %1256 }
 0x742   : > { %2731 = vrcp.f32 %v1257_v49 }
 0x745   : > { %v1260_v50 = vpop.xlane.xlu1 %1259 }
 0x746   : > { %2733 = vrcp.f32 %v1260_v50 }
 0x749   : > { %v1380_v55 = vpop.permute.xlu1 %1379 }
 0x74a   : > { %v1385_v43 = vsel %vm829_vm1, %v1380_v55, 0  ;;  %v2671_v55 = vld [vmem:[%s3431_s1] ss:$8 sps:$4 sm:$0xff]  }
 0x74c   : > { %v2732_v51 = vpop.eup %2731 }
 0x74d   : > { %v1263_v53 = vmul.f32 %v2732_v51, %v2728_v44  ;;  %v1378_v42 = vpop.permute.xlu1 %1377  ;;  %v1564_v44 = vsub.s32 2, %v3493_v28 }
 0x74f   : > { %v1565_v45 = vrot.slane %v3497_v30, %v1564_v44 }
 0x750   : > { %v2734_v52 = vpop.eup %2733 }
 0x751   : > { %v1264_v54 = vmul.f32 %v2734_v52, %v2730_v46 }
 0x753   : > { %v1265_v56 = vpack.c.bf16 %v1264_v54, %v1263_v53 }
 0x755   : > { %2466 = vmatmul.mubr.msk.bf16.vlgmr.msra.gmra.mrb[16].mxu1 %vm877_vm2, %v1265_v56  ;;  %v2673_v56 = vld [vmem:[%s3431_s1 + $0x4] ss:$8 sps:$4 sm:$0xff]  }
 0x756   : > { %2478 = vmatpush3.bf16.xpose.msra.mxu1 %v1385_v43  ;;  %2479 = vmatprep.mubr.msk.bf16.mxu1 %vm3044_vm0, %v3043_v26  ;;  %v2676_v43 = vld [vmem:[%s3431_s1 + $0x14] ss:$8 sps:$4 sm:$0xff]  }
 0x757   : > { %2489 = vmatprep.subr.bf16.mxu1 %v3043_v26 }
 0x75d   : > { %2480 = vmatmul.mubr.msk.bf16.vlgmr.msra.gmra.mrb[20].mxu1 %vm829_vm1, %v1378_v42  ;;  %v2674_v42 = vld [vmem:[%s3431_s1 + $0x10] ss:$8 sps:$4 sm:$0xff]  }
 0x75e   : > { %2493 = vmatprep.mubr.msk.bf16.mxu1 %vm3044_vm0, %v3043_v26 }
 0x828   : > { %v1306_v58 = vpop.f32.mrb[16].mxu1 }
 0x829   : > { %v2467_v59 = vpop.f32.mrb[17].mxu1 }
 0x82a   : > { %v1309_v60 = vpop.f32.mrb[18].mxu1 }
 0x82b   : > { %v1313_v61 = vpack.c.bf16 %v1309_v60, %v1306_v58  ;;  %v2468_v62 = vpop.f32.mrb[19].mxu1 }
 0x82d   : > { %2474 = vmatmul.mubr.msk.bf16.vlgmr.msra.gmra.mrb[20].mxu0 %vm829_vm1, %v1313_v61 }
 0x82e   : > { %2485 = vmatprep.mubr.msk.bf16.mxu0 %vm3044_vm0, %v3043_v26 }
 0x830   : > { %v1421_v63 = vpop.f32.mrb[20].mxu1 }
 0x831   : > { %v2481_v0 = vpop.f32.mrb[21].mxu1  ;;  %v1428_v1 = vsel %vm877_vm2, %v1421_v63, -inf }
 0x832   : > { %1429 = vmax.xlane.f32.xlu0 %v1428_v1  ;;  %v1424_v2 = vpop.f32.mrb[22].mxu1  ;;  %v2677_v0 = vld [vmem:[%s3431_s1 + $0x20] ss:$8 sps:$4 sm:$0xff]   ;;  %v2682_v1 = vld [vmem:[%s3431_s1 + $0x34] ss:$8 sps:$4 sm:$0xff]  }
 0x833   : > { %v2482_v3 = vpop.f32.mrb[23].mxu1  ;;  %v1431_v5 = vsel %vm877_vm2, %v1424_v2, -inf }
 0x834   : > { %1432 = vmax.xlane.f32.xlu1 %v1431_v5  ;;  %v2685_v3 = vld [vmem:[%s3431_s1 + $0x44] ss:$8 sps:$4 sm:$0xff]   ;;  %v2683_v5 = vld [vmem:[%s3431_s1 + $0x40] ss:$8 sps:$4 sm:$0xff]  }
 0x845   : > { %1451 = vrot.lane.b32.xlu1 %v3552_v22, %s3047_s18  ;;  %v2669_v22 = vld [vmem:[%s3429_s10 + $0x30] sm:$0xff]  }
 0x846   : > { %2490 = vmatpush3.bf16.msra.mxu1 %v2669_v22  ;;  %v2700_v22 = vld [vmem:[%s3457_s13 + $0x10] sm:$0xff]  }
 0x847   : > { %2491 = vmatprep.subr.bf16.mxu1 %v3043_v26  ;;  %v2670_v26 = vld [vmem:[%s3429_s10 + $0x38] sm:$0xff]   ;;  %s3844_s10 = sld [smem:[#allocation20_spill]] }
 0x84a   : > { %2492 = vmatpush3.bf16.msra.mxu1 %v2670_v26 }
 0x84d   : > { %p2322_p9 = scmp.ge.s32.totalorder %s3844_s10, 1 }
 0x8bf   : > { %v1430_v6 = vpop.xlane.xlu0 %1429 }
 0x8c0   : > { %v1434_v7 = vsub.f32 %v1421_v63, %v1430_v6  ;;  %v2679_v63 = vld [vmem:[%s3431_s1 + $0x24] ss:$8 sps:$4 sm:$0xff]   ;;  %v2688_v6 = vld [vmem:[%s3431_s1 + $0x54] ss:$8 sps:$4 sm:$0xff]  }
 0x8c1   : > { %v1433_v8 = vpop.xlane.xlu1 %1432 }
 0x8c2   : > { %v1436_v9 = vmul.f32 1.442695, %v1434_v7  ;;  %v1435_v10 = vsub.f32 %v1424_v2, %v1433_v8  ;;  %v2680_v2 = vld [vmem:[%s3431_s1 + $0x30] ss:$8 sps:$4 sm:$0xff]   ;;  %v2691_v8 = vld [vmem:[%s3431_s1 + $0x64] ss:$8 sps:$4 sm:$0xff]  }
 0x8c3   : > { %v2686_v7 = vld [vmem:[%s3431_s1 + $0x50] ss:$8 sps:$4 sm:$0xff]  }
 0x8c4   : > { %2735 = vpow2.f32 %v1436_v9  ;;  %v1438_v11 = vmul.f32 1.442695, %v1435_v10  ;;  %v2689_v9 = vld [vmem:[%s3431_s1 + $0x60] ss:$8 sps:$4 sm:$0xff]   ;;  %v2694_v10 = vld [vmem:[%s3431_s1 + $0x74] ss:$8 sps:$4 sm:$0xff]  }
 0x8c5   : > { %v1452_v12 = vpop.permute.xlu1 %1451 }
 0x8c6   : > { %2737 = vpow2.f32 %v1438_v11  ;;  %2484 = vmatpush3.bf16.msra.mxu0 %v1452_v12  ;;  %v2692_v11 = vld [vmem:[%s3431_s1 + $0x70] ss:$8 sps:$4 sm:$0xff]   ;;  %v2695_v12 = vld [vmem:[%s3457_s13 + $0x40] sm:$0xff]  }
 0x8c7   : > { %1710 = vmatprep.subr.bf16.mxu0 %v2673_v56  ;;  %2375 = vmatprep.subr.bf16.mxu1 %v2695_v12 }
 0x8ce   : > { %v2736_v13 = vpop.eup %2735 }
 0x8cf   : > { %v1440_v14 = vsel %vm877_vm2, %v2736_v13, 0.0 }
 0x8d0   : > { %v2738_v15 = vpop.eup %2737  ;;  %1441 = vadd.xlane.f32.xlu0 %v1440_v14  ;;  %v2697_v14 = vld [vmem:[%s3457_s13 + $0x48] sm:$0xff]  }
 0x8d1   : > { %v1443_v16 = vsel %vm877_vm2, %v2738_v15, 0.0 }
 0x8d4   : > { %1444 = vadd.xlane.f32.xlu0 %v1443_v16  ;;  %v2699_v16 = vld [vmem:[%s3457_s13 + $0x50] sm:$0xff]  }
 0x900   : > { %v1368_v20 = vpop.f32.mrb[20].mxu0 }
 0x901   : > { %v1375_v21 = vadd.f32 %v1368_v20, %v3590_v19  ;;  %v2475_v24 = vpop.f32.mrb[21].mxu0  ;;  %v2701_v20 = vld [vmem:[%s3457_s13 + $0x58] sm:$0xff]  }
 0x902   : > { %v1371_v25 = vpop.f32.mrb[22].mxu0  ;;  %v2703_v24 = vld [vmem:[%s3457_s13 + $0x60] sm:$0xff]  }
 0x903   : > { %v1376_v27 = vadd.f32 %v1371_v25, %v3592_v23  ;;  %v2476_v29 = vpop.f32.mrb[23].mxu0  ;;  %v2704_v25 = vld [vmem:[%s3457_s13 + $0x20] sm:$0xff]  }
 0x95d   : > { %v1442_v32 = vpop.xlane.xlu0 %1441 }
 0x95e   : > { %2739 = vrcp.f32 %v1442_v32 }
 0x961   : > { %v1445_v33 = vpop.xlane.xlu0 %1444 }
 0x962   : > { %2741 = vrcp.f32 %v1445_v33 }
 0x968   : > { %v2740_v34 = vpop.eup %2739 }
 0x969   : > { %v1448_v36 = vmul.f32 %v2740_v34, %v2736_v13  ;;  %v2696_v13 = vld [vmem:[%s3457_s13] sm:$0xff]  }
 0x96c   : > { %v2742_v35 = vpop.eup %2741 }
 0x96d   : > { %v1449_v37 = vmul.f32 %v2742_v35, %v2738_v15  ;;  %v2698_v15 = vld [vmem:[%s3457_s13 + $0x8] sm:$0xff]  }
 0x96f   : > { %v1450_v38 = vpack.c.bf16 %v1449_v37, %v1448_v36  ;;  %v1595_v37 = vsub.s32 5, %v3493_v28 }
 0x971   : > { %2486 = vmatmul.mubr.msk.bf16.vlgmr.msra.gmra.mrb[24].mxu0 %vm877_vm2, %v1450_v38 }
 0x972   : > { %1742 = vmatprep.mubr.bf16.mxu0 %v3042_v4  ;;  %1711 = vmatpush1.bf16.msra.mxu0 %v2671_v55 }
 0x973   : > { %1712 = vmatprep.subr.bf16.mxu0 %v2676_v43 }
 0x976   : > { %1713 = vmatpush1.bf16.msra.mxu0 %v2674_v42 }
 0x977   : > { %1714 = vmatprep.subr.bf16.mxu0 %v2679_v63 }
 0x97a   : > { %1715 = vmatpush1.bf16.msra.mxu0 %v2677_v0 }
 0x97b   : > { %1716 = vmatprep.subr.bf16.mxu0 %v2682_v1 }
 0x97e   : > { %1717 = vmatpush1.bf16.msra.mxu0 %v2680_v2  ;;  %v1793_v2 = vsub.s32 4, %v3493_v28 }
 0x97f   : > { %1718 = vmatprep.subr.bf16.mxu0 %v2685_v3 }
 0x982   : > { %1719 = vmatpush1.bf16.msra.mxu0 %v2683_v5 }
 0x983   : > { %1720 = vmatprep.subr.bf16.mxu0 %v2688_v6 }
 0x986   : > { %1721 = vmatpush1.bf16.msra.mxu0 %v2686_v7 }
 0x987   : > { %1722 = vmatprep.subr.bf16.mxu0 %v2691_v8 }
 0x98a   : > { %1723 = vmatpush1.bf16.msra.mxu0 %v2689_v9 }
 0x98b   : > { %1724 = vmatprep.subr.bf16.mxu0 %v2694_v10 }
 0x98e   : > { %1725 = vmatpush1.bf16.msra.mxu0 %v2692_v11 }
 0xa44   : > { %v1491_v19 = vpop.f32.mrb[24].mxu0 }
 0xa45   : > { %v2487_v39 = vpop.f32.mrb[25].mxu0 }
 0xa46   : > { %v1494_v40 = vpop.f32.mrb[26].mxu0  ;;  %v1601_v39 = vsub.s32 6, %v3493_v28 }
 0xa47   : > { %v1498_v23 = vpack.c.bf16 %v1494_v40, %v1491_v19  ;;  %v2488_v41 = vpop.f32.mrb[27].mxu0  ;;  %v1596_v19 = vrot.slane %v3497_v30, %v1595_v37 }
 0xa48   : > { %v1602_v44 = vrot.slane %v3497_v30, %v1601_v39 }
 0xa49   : > { %2494 = vmatmul.mubr.msk.bf16.vlgmr.msra.gmra.mrb[24].mxu1 %vm829_vm1, %v1498_v23 }
 0xa4a   : > { %2376 = vmatpush3.bf16.msra.mxu1 %v2696_v13 }
 0xa4b   : > { %2377 = vmatprep.subr.bf16.mxu1 %v2697_v14 }
 0xa4e   : > { %2378 = vmatpush3.bf16.msra.mxu1 %v2698_v15 }
 0xa4f   : > { %2379 = vmatprep.subr.bf16.mxu1 %v2699_v16 }
 0xa52   : > { %2380 = vmatpush3.bf16.msra.mxu1 %v2700_v22 }
 0xa53   : > { %2381 = vmatprep.subr.bf16.mxu1 %v2701_v20 }
 0xb1c   : > { %v1553_v46 = vpop.f32.mrb[24].mxu1 }
 0xb1d   : > { %v1560_v47 = vadd.f32 %v1553_v46, %v1375_v21  ;;  %v2495_v4 = vpop.f32.mrb[25].mxu1  ;;  %v2702_v21 = vld [vmem:[%s3457_s13 + $0x18] sm:$0xff]  }
 0xb1e   : > { %v1556_v48 = vpop.f32.mrb[26].mxu1  ;;  %2382 = vmatpush3.bf16.msra.mxu1 %v2702_v21 }
 0xb1f   : > { %v1566_v49 = vadd.f32 %v1565_v45, %v1560_v47  ;;  %v1561_v50 = vadd.f32 %v1556_v48, %v1376_v27  ;;  %v2496_v51 = vpop.f32.mrb[27].mxu1  ;;  %2383 = vmatprep.subr.bf16.mxu1 %v2703_v24  ;;  %v2705_v27 = vld [vmem:[%s3457_s13 + $0x68] sm:$0xff]  }
 0xb20   : > { %v2706_v48 = vld [vmem:[%s3457_s13 + $0x28] sm:$0xff]   ;;  %v2709_v51 = vld [vmem:[%s3457_s13 + $0x78] sm:$0xff]  }
 0xb21   : > { %v1567_v52 = vadd.f32 %v1565_v45, %v1561_v50  ;;  %v1568_v53 = vadd.f32 %v1566_v49, %v3477_v17  ;;  %v2707_v49 = vld [vmem:[%s3457_s13 + $0x70] sm:$0xff]  }
 0xb22   : > { %2384 = vmatpush3.bf16.msra.mxu1 %v2704_v25  ;;  %v2708_v50 = vld [vmem:[%s3457_s13 + $0x30] sm:$0xff]  }
 0xb23   : > { %1570 = vadd.xlane.f32.xlu0 %v1568_v53  ;;  %v1569_v54 = vadd.f32 %v1567_v52, %v3479_v18  ;;  %2385 = vmatprep.subr.bf16.mxu1 %v2705_v27  ;;  %v2710_v52 = vld [vmem:[%s3457_s13 + $0x38] sm:$0xff]  }
 0xb26   : > { %2386 = vmatpush3.bf16.msra.mxu1 %v2706_v48 }
 0xb27   : > { %1572 = vadd.xlane.f32.xlu0 %v1569_v54  ;;  %2387 = vmatprep.subr.bf16.mxu1 %v2707_v49 }
 0xb2a   : > { %2388 = vmatpush3.bf16.msra.mxu1 %v2708_v50 }
 0xb2b   : > { %2389 = vmatprep.subr.bf16.mxu1 %v2709_v51 }
 0xb2e   : > { %2390 = vmatpush3.bf16.msra.mxu1 %v2710_v52 }
 0xbb0   : > { %v1571_v57 = vpop.xlane.xlu0 %1570 }
 0xbb1   : > { %v1575_v58 = vmul.f32 0.0078125, %v1571_v57 }
 0xbb3   : > { %v3642_v59 = vsub.f32 %v1568_v53, %v1575_v58  ;;  %v1624_v53 = vsub.s32 3, %v3493_v28 }
 0xbb4   : > { %v1573_v17 = vpop.xlane.xlu0 %1572 }
 0xbb5   : > { %v1576_v18 = vmul.f32 0.0078125, %v1573_v17  ;;  %v1579_v60 = vmul.f32 %v3642_v59, %v3642_v59  ;;  %v1629_v55 = vrot.slane %v3500_v31, %v1624_v53  ;;  %v1794_v31 = vrot.slane %v3497_v30, %v1793_v2 }
 0xbb7   : > { %v3646_v61 = vsub.f32 %v1569_v54, %v1576_v18  ;;  %1581 = vadd.xlane.f32.xlu0 %v1579_v60  ;;  %v1625_v54 = vrot.slane %v3497_v30, %v1624_v53 }
 0xbb9   : > { %v1580_v62 = vmul.f32 %v3646_v61, %v3646_v61 }
 0xbbb   : > { %1583 = vadd.xlane.f32.xlu0 %v1580_v62 }
 0xc44   : > { %v1582_v29 = vpop.xlane.xlu0 %1581 }
 0xc45   : > { %v1585_v32 = vmul.f32 0.0078125, %v1582_v29 }
 0xc47   : > { %v1587_v33 = vadd.f32 1e-05, %v1585_v32 }
 0xc48   : > { %v1584_v34 = vpop.xlane.xlu0 %1583 }
 0xc49   : > { %2743 = vrsqrt.f32 %v1587_v33  ;;  %v1586_v35 = vmul.f32 0.0078125, %v1584_v34 }
 0xc4b   : > { %v1588_v36 = vadd.f32 1e-05, %v1586_v35 }
 0xc4d   : > { %2745 = vrsqrt.f32 %v1588_v36  ;;  %v1958_v36 = vsub.s32 7, %v3493_v28 }
 0xc4f   : > { %v1959_v37 = vrot.slane %v3497_v30, %v1958_v36 }
 0xc53   : > { %v2744_v38 = vpop.eup %2743 }
 0xc54   : > { %v1591_v26 = vmul.f32 %v2744_v38, %v3642_v59 }
 0xc56   : > { %v1597_v41 = vmul.f32 %v1596_v19, %v1591_v26 }
 0xc57   : > { %v2746_v40 = vpop.eup %2745 }
 0xc58   : > { %v1592_v23 = vmul.f32 %v2746_v40, %v3646_v61  ;;  %v1603_v46 = vadd.f32 %v1602_v44, %v1597_v41 }
 0xc5a   : > { %v1598_v45 = vmul.f32 %v1596_v19, %v1592_v23  ;;  %v2321_v19 = vld [vmem:[%s3455_s15 + $0x10] ss:$0 sm:$0xff] }
 0xc5c   : > { %v1604_v47 = vadd.f32 %v1602_v44, %v1598_v45 }
 0xc5e   : > { %v1605_v4 = vpack.c.bf16 %v1604_v47, %v1603_v46 }
 0xc60   : > { %1743 = vmatmul.mubr.bf16.vlgmr.msra.gmra.mrb[28].mxu0 %v1605_v4 }
 0xd33   : > { %v1744_v56 = vpop.f32.mrb[28].mxu0 }
 0xd34   : > { %v1745_v43 = vadd.f32 %v1744_v56, %v1625_v54  ;;  %v1746_v42 = vpop.f32.mrb[29].mxu0 }
 0xd35   : > { %v1747_v57 = vadd.f32 %v1746_v42, %v1629_v55  ;;  %v1748_v58 = vpop.f32.mrb[30].mxu0 }
 0xd36   : > { %v1749_v59 = vadd.f32 %v1748_v58, %v1625_v54  ;;  %v1750_v17 = vpop.f32.mrb[31].mxu0  ;;  %v1753_v60 = vmax.f32 %v1745_v43, 0.0 }
 0xd37   : > { %v1751_v18 = vadd.f32 %v1750_v17, %v1629_v55  ;;  %v1754_v62 = vmax.f32 %v1747_v57, 0.0 }
 0xd38   : > { %v1755_v61 = vmax.f32 %v1749_v59, 0.0 }
 0xd39   : > { %v1756_v63 = vmax.f32 %v1751_v18, 0.0 }
 0xd3a   : > { %v1757_v0 = vpack.c.bf16 %v1755_v61, %v1753_v60 }
 0xd3b   : > { %v1758_v1 = vpack.c.bf16 %v1756_v63, %v1754_v62 }
 0xd3d   : > { %1923 = vmatprep.mubr.bf16.mxu1 %v1758_v1 }
 0xd3e   : > { %1924 = vmatmul.mubr.bf16.vlgmr.msra.gmra.mrb[28].mxu1 %v1757_v0 }
 0xe11   : > { %v2391_v3 = vpop.f32.mrb[28].mxu1 }
 0xe12   : > { %v2392_v5 = vpop.f32.mrb[29].mxu1 }
 0xe13   : > { %v2393_v6 = vadd.f32 %v2392_v5, %v2391_v3  ;;  %v2394_v7 = vpop.f32.mrb[30].mxu1 }
 0xe14   : > { %v2395_v8 = vpop.f32.mrb[31].mxu1 }
 0xe15   : > { %v1926_v9 = vadd.f32 %v2393_v6, %v1794_v31  ;;  %v2396_v10 = vadd.f32 %v2395_v8, %v2394_v7 }
 0xe17   : > { %v1929_v11 = vadd.f32 %v2396_v10, %v1794_v31  ;;  %v1932_v12 = vadd.f32 %v1926_v9, %v1603_v46 }
 0xe19   : > { %1934 = vadd.xlane.f32.xlu1 %v1932_v12  ;;  %v1933_v13 = vadd.f32 %v1929_v11, %v1604_v47 }
 0xe1b   : > { %1936 = vadd.xlane.f32.xlu0 %v1933_v13 }
 0xea6   : > { %v1935_v14 = vpop.xlane.xlu1 %1934 }
 0xea7   : > { %v1938_v15 = vmul.f32 0.0078125, %v1935_v14 }
 0xea8   : > { %v1937_v16 = vpop.xlane.xlu0 %1936 }
 0xea9   : > { %v1940_v22 = vsub.f32 %v1932_v12, %v1938_v15  ;;  %v1939_v20 = vmul.f32 0.0078125, %v1937_v16 }
 0xeab   : > { %v1941_v21 = vsub.f32 %v1933_v13, %v1939_v20  ;;  %v1942_v24 = vmul.f32 %v1940_v22, %v1940_v22 }
 0xead   : > { %1944 = vadd.xlane.f32.xlu0 %v1942_v24  ;;  %v1943_v25 = vmul.f32 %v1941_v21, %v1941_v21 }
 0xeb1   : > { %1946 = vadd.xlane.f32.xlu0 %v1943_v25 }
 0xf3a   : > { %v1945_v27 = vpop.xlane.xlu0 %1944 }
 0xf3b   : > { %v1948_v29 = vmul.f32 0.0078125, %v1945_v27 }
 0xf3d   : > { %v1950_v32 = vadd.f32 1e-05, %v1948_v29 }
 0xf3e   : > { %v1947_v33 = vpop.xlane.xlu0 %1946 }
 0xf3f   : > { %2747 = vrsqrt.f32 %v1950_v32  ;;  %v1949_v34 = vmul.f32 0.0078125, %v1947_v33 }
 0xf41   : > { %v1951_v35 = vadd.f32 1e-05, %v1949_v34 }
 0xf43   : > { %2749 = vrsqrt.f32 %v1951_v35 }
 0xf49   : > { %v2748_v38 = vpop.eup %2747 }
 0xf4a   : > { %v1954_v26 = vmul.f32 %v2748_v38, %v1940_v22 }
 0xf4c   : > { %v1960_v39 = vmul.f32 %v1959_v37, %v1954_v26  ;;  %1971 = sbr.rel (%p2322_p9) target bundleno = 3925 (0xf55), region = 80 }
 0xf4d   : > { %v2750_v40 = vpop.eup %2749 }
 0xf4e   : > { %v1966_v23 = vadd.f32 %v2321_v19, %v1960_v39  ;;  %v1955_v41 = vmul.f32 %v2750_v40, %v1941_v21 }
 0xf50   : > { %v1961_v44 = vmul.f32 %v1959_v37, %v1955_v41  ;;  %1972 = vst [vmem:[#allocation2] sm:$0xff] (!%p2322_p9), %v1966_v23 }
 0xf52   : > { %v1967_v45 = vadd.f32 %v2321_v19, %v1961_v44 }
 0xf54   : > { %1973 = vst [vmem:[#allocation2 + $0x8] sm:$0xff] %v1967_v45 }
 0xf55 PF: > { %s3845_s1 = sld [smem:[#allocation20_spill]] }
 0xf5b   : > { %p2323_p3 = scmp.ne.s32.totalorder %s3845_s1, 1 }
 0xf5c   : > { %1978 = vst [vmem:[%s3459_s19] sm:$0xff] (!%p2323_p3), %v1966_v23  ;;  %1979 = vst [vmem:[%s3459_s19 + $0x8] sm:$0xff] (!%p2323_p3), %v1967_v45 }
 0xf5d   : > { %1977 = sbr.rel (%p2323_p3) target bundleno = 3940 (0xf64), region = 84 }
 0xf64 PF: > { %s3846_s16 = sld [smem:[#allocation28_spill]]  ;;  %s2337_s0 = sshll.u32 %s3019_s12, 8 }
 0xf65   : > { %s3847_s22 = sld [smem:[#allocation35_spill]]  ;;  %s1994_s5 = sshll.u32 %s3459_s19, 4  ;;  %s3703_s5 = int_to_ptr.vmem [resolvable:$true] %s1994_s5 }
 0xf66   : > { %s3848_s7 = sand.u32 1, %s2995_s28   ;;  %s2901_s24 = scalar_lea.vmem %s3703_s5, 256 }
 0xf67   : > { %s3707_s8 = scalar_lea.sflag [#allocation5], %s3848_s7  ;;  %p2902_p10 = scmp.ne.s32.totalorder %s3703_s5, %s2901_s24 }
 0xf68   : > { %s3048_s12 = smov [#allocation12]  }
 0xf69   : > { %s2905_s29 = sshll.u32 %s3048_s12, 4  ;;  %s2906_s29 = int_to_ptr.vmem [resolvable:$false] %s2905_s29 }
 0xf6a   : > { %p3849_p12 = scmp.ne.s32.totalorder %s3846_s16, 0  ;;  %s2907_s21 = scalar_lea.vmem %s2906_s29, 512 }
 0xf6b   : > { %s3700_s25 = scalar_lea.hbm %s3847_s22, %s2337_s0  ;;  %p2908_p11 = scmp.lt.s32.totalorder %s3703_s5, %s2906_s29 }
 0xf6c   : > { %p2903_p7 = pnand %p2902_p10, %p3849_p12  ;;  %p2909_p1 = scmp.lt.s32.totalorder %s2907_s21, %s2901_s24 }
 0xf6e   : > { %p2904_p8 = pneg %p2903_p7  ;;  %p2910_p2 = por %p2909_p1, %p2908_p11 }
 0xf70   : > { %p2911_p5 = pnand %p2910_p2, %p2904_p8 }
 0xf72   : > { %2914 = shalt.err (!%p2911_p5)
}
 0xf73   : > { %s2915_s19 = scalar_lea.hbm %s3700_s25, 256  ;;  %s2919_s20 = scalar_lea.hbm %s3847_s22, 512 }
 0xf74   : > { %p2916_p0 = scmp.ne.s32.totalorder %s3700_s25, %s2915_s19  ;;  %p2920_p6 = scmp.lt.u32.totalorder %s3700_s25, %s3847_s22 }
 0xf75   : > { %p2921_p9 = scmp.lt.u32.totalorder %s2919_s20, %s2915_s19  ;;  %p2923_p10 = scmp.lt.u32.totalorder %s2915_s19, %s3700_s25 }
 0xf76   : > { %p2917_p4 = pnand %p2916_p0, %p3849_p12 }
 0xf77   : > { %p2922_p3 = por %p2921_p9, %p2920_p6 }
 0xf78   : > { %p2918_p13 = pneg %p2917_p4 }
 0xf79   : > { %p2924_p7 = por %p2923_p10, %p2922_p3 }
 0xf7b   : > { %p2925_p8 = pnand %p2924_p7, %p2918_p13 }
 0xf7d   : > { %2928 = shalt.err (!%p2925_p8)
}
 0xf7e   : > { %s3049_s15 = smov 128   ;;  %s3050_s13 = smov 8  }
 0xf7f   : > { %2507 = dma.vmem_to_hbm [thread:$0]  (%p3849_p12), %s3703_s5, 256, %s3700_s25, %s3707_s8, %s3049_s15, %s3049_s15, %s3050_s13  }
 0xf80 PF: > { %s3850_s11 = sld [smem:[#allocation23_spill]]  ;;  %s3851_s3 = sld [smem:[#allocation17_spill]] }
 0xf81   : > { %s3852_s18 = sld [smem:[#allocation29_spill]] }
 0xf86   : > { %p2530_p11 = scmp.ge.s32.totalorder %s3850_s11, 2  ;;  %s2009_s10 = sand.u32 1, %s3851_s3  }
 0xf87   : > { %p3853_p1 = scmp.ne.s32.totalorder %s3852_s18, 0  ;;  %s2010_s1 = scalar_lea.sflag [#allocation5], %s2009_s10 }
 0xf89   : > { %p2526_p2 = pnand %p2530_p11, %p3853_p1 }
 0xf8b   : > { %2986 = dma.done.wait (!%p2526_p2), %s2010_s1, 256  }
 0xf8c   : > { %2988 = vsyncadd (!%p2526_p2), %s2010_s1, 4294967040  ;;  %s30_s15 = sadd.s32 1, %s3850_s11   ;;  %s3854_s0 = sld [smem:[#allocation18_spill]] }
 0xf8d   : > { %p27_p5 = scmp.ge.s32.totalorder %s30_s15, 6   ;;  %s3855_s29 = sld [smem:[#allocation27_spill]] }
 0xf8e   : > { %s3856_s16 = sld [smem:[#allocation19_spill]]  ;;  %s3857_s10 = sld [smem:[#allocation26_spill]] }
 0xf8f   : > { %s3858_s11 = sld [smem:[#allocation21_spill]]  ;;  %s3859_s12 = sld [smem:[#allocation22_spill]] }
 0xf90   : > { %s3860_s13 = sld [smem:[#allocation24_spill]]  ;;  %s3861_s14 = sld [smem:[#allocation25_spill]] }
 0xf91   : > { %s3862_s27 = smov %s2995_s28  ;;  %s3864_s30 = smov %s3007_s9 }
 0xf92   : > { %s3863_s28 = smov %s3854_s0  ;;  %29 = sbr.rel (!%p27_p5) target bundleno = 20 (0x14), region = 169 }
 0xf94   : > { %s3865_s9 = smov %s3856_s16 }
 0xf99   :  { %2015 = vsyncpa [#allocation4], 1 }
 0xf9a   :  { %2017 = vsyncpa [#allocation4 + $0x1], 1 }
 0xf9b   :  { %2018 = vsyncpa [#allocation7], 1 }
 0xf9c   :  { %2020 = vsyncpa [#allocation7 + $0x1], 1 }
 0xf9d   :  { %2021 = vsyncpa [#allocation10], 1 }
 0xf9e   :  { %2023 = vsyncpa [#allocation10 + $0x1], 1 }
 0xf9f   :  { %2024 = vsyncpa [#allocation5], 1 }
 0xfa0   :  { %2026 = vsyncpa [#allocation5 + $0x1], 1 }

</bundles_post_ra>
